<compile_context>
chip_gen: v6e
topology: v6e:2x2x1
jax: 0.10.0
libtpu: 0.0.40
codegen_flags: <defaults>
</compile_context>

<pallas_src>
import functools
import numpy as np
import jax
import jax.numpy as jnp
from jax.experimental import pallas as pl
from jax.experimental.pallas import tpu as pltpu

# ----------------------------- hyper-parameters ------------------------------
EDIT_DECAY = 0.1
GRAD_STRIDE = 0.5
REG_STRENGTH = 0.01
LR = 0.1          # lr used by the pseudo SGD update (step_wo_state_update_sgd)
HIDDEN = 32

LANES = 128
SUBLANES = 8
MAX_PACK_LANES = 2048


# ------------------------- Pallas kernel: GMED edit --------------------------
def _gmed_edit_kernel(coef_ref, xv_ref, g1v_ref, g2v_ref,
                      xa_ref, g1a_ref, g2a_ref,
                      ov_ref, oa_ref, *, one_minus_reg):
    # coef_ref: (B,) f32 in SMEM = grad_stride * (1 - edit_decay)**age
    # x/g1/g2/o refs: (1, rows, width) f32 blocks, one buffer sample per step.
    # Contract (GMED.forward): grad_reg == -edit_grad1  =>
    #   delta = -grad_reg*reg + (g2 - g1) = g2 - (1 - reg) * g1
    c = coef_ref[pl.program_id(0)]
    omr = jnp.float32(one_minus_reg)
    ov_ref[...] = xv_ref[...] + c * (g2v_ref[...] - omr * g1v_ref[...])
    oa_ref[...] = xa_ref[...] + c * (g2a_ref[...] - omr * g1a_ref[...])


def _pack_shape(feat, max_lanes=MAX_PACK_LANES):
    """(rows, width) for a per-sample feature vector of size `feat`.

    width is the widest multiple of 128 (<= max_lanes) dividing feat such that
    rows = feat // width is a multiple of 8 (full sublanes -> full vregs,
    unmasked stores, long DMA bursts). Falls back to the widest multiple-of-128
    divisor when no such width exists (block still equals full per-sample dims,
    so the layout stays legal)."""
    assert feat % LANES == 0, "per-sample features must be lane (128) aligned"
    best_full, best_any = None, LANES
    w = LANES
    while w <= min(feat, max_lanes):
        if feat % w == 0:
            best_any = w
            if (feat // w) % SUBLANES == 0:
                best_full = w
        w += LANES
    width = best_full if best_full is not None else best_any
    return feat // width, width


def gmed_edit_fused(buf_video, buf_audio, g1_v, g1_a, g2_v, g2_a, mem_ages, *,
                    edit_decay, grad_stride, reg_strength):
    """Fused GMED memory edit of video + audio buffer samples (one kernel).

    Assumes grad_reg == -edit_grad1 (always true in GMED.forward); the grad_reg
    stream is folded into the (1 - reg_strength) constant.
    """
    B = buf_video.shape[0]
    Fv = int(np.prod(buf_video.shape[1:]))
    Fa = int(np.prod(buf_audio.shape[1:]))
    rv, Wv = _pack_shape(Fv)
    ra, Wa = _pack_shape(Fa)

    # no-copy reshapes only: no concat / repack HBM passes around the kernel
    xv, g1v, g2v = (t.reshape(B, rv, Wv) for t in (buf_video, g1_v, g2_v))
    xa, g1a, g2a = (t.reshape(B, ra, Wa) for t in (buf_audio, g1_a, g2_a))

    # tiny per-sample coefficient, read as a scalar from SMEM inside the kernel
    coef = (jnp.float32(grad_stride) *
            (1.0 - edit_decay) ** mem_ages.reshape(B).astype(jnp.float32))

    vspec = pl.BlockSpec((1, rv, Wv), lambda b: (b, 0, 0))
    aspec = pl.BlockSpec((1, ra, Wa), lambda b: (b, 0, 0))
    cspec = pl.BlockSpec(memory_space=pltpu.MemorySpace.SMEM)

    # explicit VMEM limit from the actual footprint (3 in + 1 out per stream,
    # double-buffered), with headroom; never rely on the per-chip default.
    bytes_per_step = 4 * 4 * (rv * Wv + ra * Wa)
    vmem_limit = int(min(max(3 * bytes_per_step, 4 << 20), 32 << 20))
    # TODO(synk): tile rows *within* a sample (extra grid axis) once the
    # per-sample footprint approaches the VMEM limit (large video buffers).
    # TODO(synk): optionally store buffer/grad streams in bf16 and upcast in
    # the kernel to halve HBM traffic if the model tolerates it.

    kernel = functools.partial(_gmed_edit_kernel,
                               one_minus_reg=1.0 - reg_strength)
    ov, oa = pl.pallas_call(
        kernel,
        out_shape=(jax.ShapeDtypeStruct((B, rv, Wv), buf_video.dtype),
                   jax.ShapeDtypeStruct((B, ra, Wa), buf_audio.dtype)),
        grid=(B,),
        in_specs=[cspec, vspec, vspec, vspec, aspec, aspec, aspec],
        out_specs=(vspec, aspec),
        input_output_aliases={1: 0, 4: 1},     # edit is buf_x += ...
        compiler_params=pltpu.CompilerParams(
            dimension_semantics=("parallel",),
            vmem_limit_bytes=vmem_limit),
    )(coef, xv, g1v, g2v, xa, g1a, g2a)

    return ov.reshape(buf_video.shape), oa.reshape(buf_audio.shape)


# --------------------- Pallas kernel: synthetic backbone ---------------------
# The real backbone is an arbitrary external nn.Module; here a small
# deterministic linear head producing per-sample logits and a scalar loss
# (0.5 * sum(logits[:, :HIDDEN]**2)).  The incoming batch and the edited
# buffer batch are fused (concatenated) inside the kernel in VMEM, so there is
# no HBM concat pass before the matmul.  The dot runs bf16-in / f32-accumulate
# on the MXU.
def _backbone_kernel(xv_in_ref, xa_in_ref, xv_buf_ref, xa_buf_ref,
                     wv_ref, wa_ref, b_ref, logits_ref, loss_ref, *, hidden):
    xv = jnp.concatenate([xv_in_ref[...], xv_buf_ref[...]],
                         axis=0).astype(jnp.bfloat16)
    xa = jnp.concatenate([xa_in_ref[...], xa_buf_ref[...]],
                         axis=0).astype(jnp.bfloat16)
    logits = (jnp.dot(xv, wv_ref[...].astype(jnp.bfloat16),
                      preferred_element_type=jnp.float32)
              + jnp.dot(xa, wa_ref[...].astype(jnp.bfloat16),
                        preferred_element_type=jnp.float32)
              + b_ref[...])
    logits_ref[...] = logits
    valid = logits[:, :hidden]          # exclude lane-padded logit columns
    loss_ref[0, 0] = 0.5 * jnp.sum(valid * valid)


def backbone_forward_pallas(in_video, in_audio, buf_video, buf_audio, params):
    # TODO(synk): single-block layout only works for toy sizes; a real backbone
    # needs a K-tiled grid with an f32 accumulator sized for v7x's 64 MiB VMEM.
    n_in = in_video.shape[0]
    n_buf = buf_video.shape[0]
    ncat = n_in + n_buf
    xv_in = in_video.reshape(n_in, -1)
    xa_in = in_audio.reshape(n_in, -1)
    xv_bf = buf_video.reshape(n_buf, -1)
    xa_bf = buf_audio.reshape(n_buf, -1)

    hpad = ((HIDDEN + LANES - 1) // LANES) * LANES
    wv = jnp.pad(params["wv"], ((0, 0), (0, hpad - HIDDEN)))
    wa = jnp.pad(params["wa"], ((0, 0), (0, hpad - HIDDEN)))
    b = jnp.pad(params["b"], ((0, 0), (0, hpad - HIDDEN)))
    # TODO(synk): HIDDEN=32 padded to 128 output lanes wastes MXU columns; pack
    # multiple heads into the 128 lanes if the real backbone has them.

    kernel = functools.partial(_backbone_kernel, hidden=HIDDEN)
    logits_pad, loss = pl.pallas_call(
        kernel,
        out_shape=(jax.ShapeDtypeStruct((ncat, hpad), jnp.float32),
                   jax.ShapeDtypeStruct((1, 1), jnp.float32)),
        out_specs=(pl.BlockSpec(memory_space=pltpu.MemorySpace.VMEM),
                   pl.BlockSpec(memory_space=pltpu.MemorySpace.SMEM)),
    )(xv_in, xa_in, xv_bf, xa_bf, wv, wa, b)
    return logits_pad[:, :HIDDEN], loss[0, 0]


# --------------------------- plain-JAX glue (autograd) -----------------------
def backbone_loss(params, video, audio):
    # Synthetic backbone loss used only to produce edit_grad1 / edit_grad2 via
    # autograd (no clean Pallas equivalent of generic backbone autograd).
    # Explicit HIGHEST precision keeps the jitted kernel path and the eager
    # reference path numerically identical.
    n = video.shape[0]
    xv = video.reshape(n, -1)
    xa = audio.reshape(n, -1)
    hi = jax.lax.Precision.HIGHEST
    logits = (jnp.dot(xv, params["wv"], precision=hi)
              + jnp.dot(xa, params["wa"], precision=hi)
              + params["b"])
    return 0.5 * jnp.sum(logits ** 2)


def gmed_training_step(params, inputs_video, inputs_audio,
                       buf_video, buf_audio, mem_ages):
    # --- pre_loss grads w.r.t. buffer samples (edit_grad1; grad_reg = -grad) --
    grad_wrt_inputs = jax.grad(backbone_loss, argnums=(1, 2))
    g1_v, g1_a = grad_wrt_inputs(params, buf_video, buf_audio)

    # --- get_loss_and_pseudo_update: one SGD step on the incoming batch ------
    # TODO(synk): Adam/AdamW step_wo_state_update variants not modeled; SGD only.
    gparams = jax.grad(backbone_loss, argnums=0)(params, inputs_video,
                                                 inputs_audio)
    params_post = jax.tree_util.tree_map(lambda p, g: p - LR * g,
                                         params, gparams)

    # --- post_loss grads w.r.t. buffer samples (edit_grad2) ------------------
    g2_v, g2_a = grad_wrt_inputs(params_post, buf_video, buf_audio)

    # --- GMED edit: one fused Pallas kernel for video + audio ----------------
    edited_video, edited_audio = gmed_edit_fused(
        buf_video, buf_audio, g1_v, g1_a, g2_v, g2_a, mem_ages,
        edit_decay=EDIT_DECAY, grad_stride=GRAD_STRIDE,
        reg_strength=REG_STRENGTH)
    # TODO(synk): buffer.add_data / get_mem_ages bookkeeping is stateful python,
    # not modeled here.

    # --- load_cache (params restored = original params) + fused forward ------
    # batch concat is fused into the backbone kernel (no HBM concat pass)
    logits, loss = backbone_forward_pallas(
        inputs_video, inputs_audio, edited_video, edited_audio, params)
    return logits, loss, edited_video, edited_audio


# ---------------------------------- main --------------------------------------
if __name__ == "__main__":
    B = 2                                # GMED batch_size
    video_shape = (B, 4, 4, 8, 8)        # NCTHW  -> F = 1024
    audio_shape = (B, 4, 16, 16)         # NCHW   -> F = 1024
    Fv = int(np.prod(video_shape[1:]))
    Fa = int(np.prod(audio_shape[1:]))

    key = jax.random.PRNGKey(0)
    ks = jax.random.split(key, 7)
    inputs_video = jax.random.normal(ks[0], video_shape, jnp.float32)
    inputs_audio = jax.random.normal(ks[1], audio_shape, jnp.float32)
    buf_video = jax.random.normal(ks[2], video_shape, jnp.float32)
    buf_audio = jax.random.normal(ks[3], audio_shape, jnp.float32)
    mem_ages = jnp.array([1.0, 3.0], jnp.float32)   # ages of buffer samples

    # deterministic synthetic backbone parameters
    params = {
        "wv": 0.02 * jax.random.normal(ks[4], (Fv, HIDDEN), jnp.float32),
        "wa": 0.02 * jax.random.normal(ks[5], (Fa, HIDDEN), jnp.float32),
        "b": 0.01 * jax.random.normal(ks[6], (1, HIDDEN), jnp.float32),
    }

    step = jax.jit(gmed_training_step)
    logits, loss, ed_v, ed_a = step(params, inputs_video, inputs_audio,
                                    buf_video, buf_audio, mem_ages)
    jax.block_until_ready((logits, loss, ed_v, ed_a))

    # ----------------------- pure-JAX reference check -------------------------
    def edit_ref(x, greg, g1, g2, ages):
        decay = (1.0 - EDIT_DECAY) ** ages.reshape((B,) + (1,) * (x.ndim - 1))
        return x + GRAD_STRIDE * decay * (-greg * REG_STRENGTH + (g2 - g1))

    grad_wrt_inputs = jax.grad(backbone_loss, argnums=(1, 2))
    g1_v, g1_a = grad_wrt_inputs(params, buf_video, buf_audio)
    gparams = jax.grad(backbone_loss, argnums=0)(params, inputs_video,
                                                 inputs_audio)
    params_post = jax.tree_util.tree_map(lambda p, g: p - LR * g, params,
                                         gparams)
    g2_v, g2_a = grad_wrt_inputs(params_post, buf_video, buf_audio)
    ref_v = edit_ref(buf_video, -g1_v, g1_v, g2_v, mem_ages)
    ref_a = edit_ref(buf_audio, -g1_a, g1_a, g2_a, mem_ages)
    np.testing.assert_allclose(np.asarray(ed_v), np.asarray(ref_v),
                               rtol=1e-5, atol=1e-5)
    np.testing.assert_allclose(np.asarray(ed_a), np.asarray(ref_a),
                               rtol=1e-5, atol=1e-5)

    # backbone reference with the same bf16-in / f32-accumulate precision
    def bf16_logits(v, a, p):
        n = v.shape[0]
        xv = v.reshape(n, -1).astype(jnp.bfloat16)
        xa = a.reshape(n, -1).astype(jnp.bfloat16)
        return (jnp.dot(xv, p["wv"].astype(jnp.bfloat16),
                        preferred_element_type=jnp.float32)
                + jnp.dot(xa, p["wa"].astype(jnp.bfloat16),
                          preferred_element_type=jnp.float32)
                + p["b"])

    cat_v = jnp.concatenate([inputs_video, ref_v], axis=0)
    cat_a = jnp.concatenate([inputs_audio, ref_a], axis=0)
    ref_logits = bf16_logits(cat_v, cat_a, params)
    ref_loss = 0.5 * jnp.sum(ref_logits ** 2)
    np.testing.assert_allclose(np.asarray(logits), np.asarray(ref_logits),
                               rtol=2e-3, atol=2e-3)
    np.testing.assert_allclose(np.asarray(loss), np.asarray(ref_loss),
                               rtol=2e-3, atol=2e-2)

    print("KERNEL_OK")
</pallas_src>

<mosaic_0001>
module attributes {stable_mosaic.version = 11 : i64} {
  func.func @_gmed_edit_kernel(%arg0: i32, %arg1: memref<2xf32, #tpu.memory_space<smem>>, %arg2: memref<1x8x128xf32, #tpu.memory_space<vmem>>, %arg3: memref<1x8x128xf32, #tpu.memory_space<vmem>>, %arg4: memref<1x8x128xf32, #tpu.memory_space<vmem>>, %arg5: memref<1x8x128xf32, #tpu.memory_space<vmem>>, %arg6: memref<1x8x128xf32, #tpu.memory_space<vmem>>, %arg7: memref<1x8x128xf32, #tpu.memory_space<vmem>>, %arg8: memref<1x8x128xf32, #tpu.memory_space<vmem>>, %arg9: memref<1x8x128xf32, #tpu.memory_space<vmem>>) attributes {dimension_semantics = [#tpu.dimension_semantics<parallel>], iteration_bounds = array<i64: 2>, scalar_prefetch = 0 : i64, scratch_operands = 0 : i64, tpu.core_type = #tpu.core_type<tc>, window_params = [{transform_indices = @transform_0, window_bounds = array<i64: 2>}, {transform_indices = @transform_1, window_bounds = array<i64: 1, 8, 128>}, {transform_indices = @transform_2, window_bounds = array<i64: 1, 8, 128>}, {transform_indices = @transform_3, window_bounds = array<i64: 1, 8, 128>}, {transform_indices = @transform_4, window_bounds = array<i64: 1, 8, 128>}, {transform_indices = @transform_5, window_bounds = array<i64: 1, 8, 128>}, {transform_indices = @transform_6, window_bounds = array<i64: 1, 8, 128>}, {transform_indices = @transform_7, window_bounds = array<i64: 1, 8, 128>}, {transform_indices = @transform_8, window_bounds = array<i64: 1, 8, 128>}]} {
    %0 = arith.index_cast %arg0 : i32 to index
    %1 = memref.load %arg1[%0] : memref<2xf32, #tpu.memory_space<smem>>
    %c0 = arith.constant 0 : index
    %c0_0 = arith.constant 0 : index
    %c0_1 = arith.constant 0 : index
    %2 = vector.load %arg2[%c0, %c0_0, %c0_1] : memref<1x8x128xf32, #tpu.memory_space<vmem>>, vector<1x8x128xf32>
    %c0_2 = arith.constant 0 : index
    %c0_3 = arith.constant 0 : index
    %c0_4 = arith.constant 0 : index
    %3 = vector.load %arg4[%c0_2, %c0_3, %c0_4] : memref<1x8x128xf32, #tpu.memory_space<vmem>>, vector<1x8x128xf32>
    %c0_5 = arith.constant 0 : index
    %c0_6 = arith.constant 0 : index
    %c0_7 = arith.constant 0 : index
    %4 = vector.load %arg3[%c0_5, %c0_6, %c0_7] : memref<1x8x128xf32, #tpu.memory_space<vmem>>, vector<1x8x128xf32>
    %cst = arith.constant 9.900000e-01 : f32
    %5 = vector.broadcast %cst : f32 to vector<1x8x128xf32>
    %6 = arith.mulf %5, %4 : vector<1x8x128xf32>
    %7 = arith.subf %3, %6 : vector<1x8x128xf32>
    %8 = vector.broadcast %1 : f32 to vector<1x8x128xf32>
    %9 = arith.mulf %8, %7 : vector<1x8x128xf32>
    %10 = arith.addf %2, %9 : vector<1x8x128xf32>
    %c0_8 = arith.constant 0 : index
    %c0_9 = arith.constant 0 : index
    %c0_10 = arith.constant 0 : index
    %11 = vector.load %arg8[%c0_8, %c0_9, %c0_10] : memref<1x8x128xf32, #tpu.memory_space<vmem>>, vector<1x8x128xf32>
    tpu.vector_store %arg8[%c0_8, %c0_9, %c0_10], %10 {strides = array<i32>} : memref<1x8x128xf32, #tpu.memory_space<vmem>>, vector<1x8x128xf32>,
    %c0_11 = arith.constant 0 : index
    %c0_12 = arith.constant 0 : index
    %c0_13 = arith.constant 0 : index
    %12 = vector.load %arg5[%c0_11, %c0_12, %c0_13] : memref<1x8x128xf32, #tpu.memory_space<vmem>>, vector<1x8x128xf32>
    %c0_14 = arith.constant 0 : index
    %c0_15 = arith.constant 0 : index
    %c0_16 = arith.constant 0 : index
    %13 = vector.load %arg7[%c0_14, %c0_15, %c0_16] : memref<1x8x128xf32, #tpu.memory_space<vmem>>, vector<1x8x128xf32>
    %c0_17 = arith.constant 0 : index
    %c0_18 = arith.constant 0 : index
    %c0_19 = arith.constant 0 : index
    %14 = vector.load %arg6[%c0_17, %c0_18, %c0_19] : memref<1x8x128xf32, #tpu.memory_space<vmem>>, vector<1x8x128xf32>
    %cst_20 = arith.constant 9.900000e-01 : f32
    %15 = vector.broadcast %cst_20 : f32 to vector<1x8x128xf32>
    %16 = arith.mulf %15, %14 : vector<1x8x128xf32>
    %17 = arith.subf %13, %16 : vector<1x8x128xf32>
    %18 = vector.broadcast %1 : f32 to vector<1x8x128xf32>
    %19 = arith.mulf %18, %17 : vector<1x8x128xf32>
    %20 = arith.addf %12, %19 : vector<1x8x128xf32>
    %c0_21 = arith.constant 0 : index
    %c0_22 = arith.constant 0 : index
    %c0_23 = arith.constant 0 : index
    %21 = vector.load %arg9[%c0_21, %c0_22, %c0_23] : memref<1x8x128xf32, #tpu.memory_space<vmem>>, vector<1x8x128xf32>
    tpu.vector_store %arg9[%c0_21, %c0_22, %c0_23], %20 {strides = array<i32>} : memref<1x8x128xf32, #tpu.memory_space<vmem>>, vector<1x8x128xf32>,
    return
  }
  func.func @transform_0(%arg0: i32) -> i32 {
    %c0_i32 = arith.constant 0 : i32
    %c0_i32_0 = arith.constant 0 : i32
    return %c0_i32 : i32
  }
  func.func @transform_1(%arg0: i32) -> (i32, i32, i32) {
    %c0_i32 = arith.constant 0 : i32
    %c0_i32_0 = arith.constant 0 : i32
    %c0_i32_1 = arith.constant 0 : i32
    return %arg0, %c0_i32, %c0_i32_0 : i32, i32, i32
  }
  func.func @transform_2(%arg0: i32) -> (i32, i32, i32) {
    %c0_i32 = arith.constant 0 : i32
    %c0_i32_0 = arith.constant 0 : i32
    %c0_i32_1 = arith.constant 0 : i32
    return %arg0, %c0_i32, %c0_i32_0 : i32, i32, i32
  }
  func.func @transform_3(%arg0: i32) -> (i32, i32, i32) {
    %c0_i32 = arith.constant 0 : i32
    %c0_i32_0 = arith.constant 0 : i32
    %c0_i32_1 = arith.constant 0 : i32
    return %arg0, %c0_i32, %c0_i32_0 : i32, i32, i32
  }
  func.func @transform_4(%arg0: i32) -> (i32, i32, i32) {
    %c0_i32 = arith.constant 0 : i32
    %c0_i32_0 = arith.constant 0 : i32
    %c0_i32_1 = arith.constant 0 : i32
    return %arg0, %c0_i32, %c0_i32_0 : i32, i32, i32
  }
  func.func @transform_5(%arg0: i32) -> (i32, i32, i32) {
    %c0_i32 = arith.constant 0 : i32
    %c0_i32_0 = arith.constant 0 : i32
    %c0_i32_1 = arith.constant 0 : i32
    return %arg0, %c0_i32, %c0_i32_0 : i32, i32, i32
  }
  func.func @transform_6(%arg0: i32) -> (i32, i32, i32) {
    %c0_i32 = arith.constant 0 : i32
    %c0_i32_0 = arith.constant 0 : i32
    %c0_i32_1 = arith.constant 0 : i32
    return %arg0, %c0_i32, %c0_i32_0 : i32, i32, i32
  }
  func.func @transform_7(%arg0: i32) -> (i32, i32, i32) {
    %c0_i32 = arith.constant 0 : i32
    %c0_i32_0 = arith.constant 0 : i32
    %c0_i32_1 = arith.constant 0 : i32
    return %arg0, %c0_i32, %c0_i32_0 : i32, i32, i32
  }
  func.func @transform_8(%arg0: i32) -> (i32, i32, i32) {
    %c0_i32 = arith.constant 0 : i32
    %c0_i32_0 = arith.constant 0 : i32
    %c0_i32_1 = arith.constant 0 : i32
    return %arg0, %c0_i32, %c0_i32_0 : i32, i32, i32
  }
}

module attributes {stable_mosaic.version = 11 : i64} {
  func.func @_backbone_kernel(%arg0: memref<2x1024xf32, #tpu.memory_space<vmem>>, %arg1: memref<2x1024xf32, #tpu.memory_space<vmem>>, %arg2: memref<2x1024xf32, #tpu.memory_space<vmem>>, %arg3: memref<2x1024xf32, #tpu.memory_space<vmem>>, %arg4: memref<1024x128xf32, #tpu.memory_space<vmem>>, %arg5: memref<1024x128xf32, #tpu.memory_space<vmem>>, %arg6: memref<1x128xf32, #tpu.memory_space<vmem>>, %arg7: memref<4x128xf32, #tpu.memory_space<vmem>>, %arg8: memref<1x1xf32, #tpu.memory_space<smem>>) attributes {dimension_semantics = [], scalar_prefetch = 0 : i64, scratch_operands = 0 : i64, tpu.core_type = #tpu.core_type<tc>} {
    %c0 = arith.constant 0 : index
    %c0_0 = arith.constant 0 : index
    %0 = vector.load %arg0[%c0, %c0_0] : memref<2x1024xf32, #tpu.memory_space<vmem>>, vector<2x1024xf32>
    %c0_1 = arith.constant 0 : index
    %c0_2 = arith.constant 0 : index
    %1 = vector.load %arg2[%c0_1, %c0_2] : memref<2x1024xf32, #tpu.memory_space<vmem>>, vector<2x1024xf32>
    %2 = tpu.concatenate %0, %1 in 0 : vector<2x1024xf32>, vector<2x1024xf32> -> vector<4x1024xf32>
    %3 = arith.truncf %2 : vector<4x1024xf32> to vector<4x1024xbf16>
    %c0_3 = arith.constant 0 : index
    %c0_4 = arith.constant 0 : index
    %4 = vector.load %arg1[%c0_3, %c0_4] : memref<2x1024xf32, #tpu.memory_space<vmem>>, vector<2x1024xf32>
    %c0_5 = arith.constant 0 : index
    %c0_6 = arith.constant 0 : index
    %5 = vector.load %arg3[%c0_5, %c0_6] : memref<2x1024xf32, #tpu.memory_space<vmem>>, vector<2x1024xf32>
    %6 = tpu.concatenate %4, %5 in 0 : vector<2x1024xf32>, vector<2x1024xf32> -> vector<4x1024xf32>
    %7 = arith.truncf %6 : vector<4x1024xf32> to vector<4x1024xbf16>
    %c0_7 = arith.constant 0 : index
    %c0_8 = arith.constant 0 : index
    %8 = vector.load %arg4[%c0_7, %c0_8] : memref<1024x128xf32, #tpu.memory_space<vmem>>, vector<1024x128xf32>
    %9 = arith.truncf %8 : vector<1024x128xf32> to vector<1024x128xbf16>
    %cst = arith.constant dense<0.000000e+00> : vector<4x128xf32>
    %10 = tpu.matmul %3, %9, %cst {dimension_numbers = #tpu.dot_dimension_numbers<[1], [0], [0], [1], [0, 0, 1, 1], [], []>} : vector<4x1024xbf16>, vector<1024x128xbf16>, vector<4x128xf32> -> vector<4x128xf32>
    %c0_9 = arith.constant 0 : index
    %c0_10 = arith.constant 0 : index
    %11 = vector.load %arg5[%c0_9, %c0_10] : memref<1024x128xf32, #tpu.memory_space<vmem>>, vector<1024x128xf32>
    %12 = arith.truncf %11 : vector<1024x128xf32> to vector<1024x128xbf16>
    %cst_11 = arith.constant dense<0.000000e+00> : vector<4x128xf32>
    %13 = tpu.matmul %7, %12, %cst_11 {dimension_numbers = #tpu.dot_dimension_numbers<[1], [0], [0], [1], [0, 0, 1, 1], [], []>} : vector<4x1024xbf16>, vector<1024x128xbf16>, vector<4x128xf32> -> vector<4x128xf32>
    %14 = arith.addf %10, %13 : vector<4x128xf32>
    %c0_12 = arith.constant 0 : index
    %c0_13 = arith.constant 0 : index
    %15 = vector.load %arg6[%c0_12, %c0_13] : memref<1x128xf32, #tpu.memory_space<vmem>>, vector<1x128xf32>
    %16 = vector.broadcast %15 : vector<1x128xf32> to vector<4x128xf32>
    %17 = arith.addf %14, %16 : vector<4x128xf32>
    %c0_14 = arith.constant 0 : index
    %c0_15 = arith.constant 0 : index
    %18 = vector.load %arg7[%c0_14, %c0_15] : memref<4x128xf32, #tpu.memory_space<vmem>>, vector<4x128xf32>
    tpu.vector_store %arg7[%c0_14, %c0_15], %17 {strides = array<i32>} : memref<4x128xf32, #tpu.memory_space<vmem>>, vector<4x128xf32>,
    %19 = vector.extract_strided_slice %17 {offsets = [0, 0], sizes = [4, 32], strides = [1, 1]} : vector<4x128xf32> to vector<4x32xf32>
    %20 = arith.mulf %19, %19 : vector<4x32xf32>
    %21 = vector.shape_cast %20 : vector<4x32xf32> to vector<1x4x32xf32>
    %cst_16 = arith.constant dense<0.000000e+00> : vector<1xf32>
    %22 = vector.multi_reduction <add>, %21, %cst_16 [1, 2] : vector<1x4x32xf32> to vector<1xf32>
    %23 = vector.shape_cast %22 : vector<1xf32> to vector<1x1x1xf32>
    %24 = vector.extract %23[0, 0, 0] : f32 from vector<1x1x1xf32>
    %cst_17 = arith.constant 5.000000e-01 : f32
    %25 = arith.mulf %cst_17, %24 : f32
    %c0_18 = arith.constant 0 : index
    %c0_19 = arith.constant 0 : index
    %26 = memref.load %arg8[%c0_18, %c0_19] : memref<1x1xf32, #tpu.memory_space<smem>>
    memref.store %25, %arg8[%c0_18, %c0_19] : memref<1x1xf32, #tpu.memory_space<smem>>
    return
  }
}

</mosaic_0001>

<bundles_post_ra>
// kernel: gmed_training_step.2
= control target key start
LH: loop header
LB: loop body
LE: loop exit
PB: predicated region body
PF: predicated region fallthrough
CT: control target
= control target key end

     0   :  { %14 = vsyncpa [#allocation3], 0  ;;  %s694_s27 = smov 0   ;;  %s743_s0 = inlined_call_operand.vmem [shape: f32[2], index: 0, kind: input, shape index: {}]   ;;  %s744_s1 = inlined_call_operand.vmem [shape: f32[2,8,128], index: 1, kind: input, shape index: {}, may-alias: {1,7}]   ;;  %s745_s2 = inlined_call_operand.vmem [shape: f32[2,8,128], index: 2, kind: input, shape index: {}]   ;;  %s746_s3 = inlined_call_operand.vmem [shape: f32[2,8,128], index: 3, kind: input, shape index: {}]   ;;  %s747_s4 = inlined_call_operand.vmem [shape: f32[2,8,128], index: 4, kind: input, shape index: {}, may-alias: {4,8}]   ;;  %s748_s5 = inlined_call_operand.vmem [shape: f32[2,8,128], index: 5, kind: input, shape index: {}]   ;;  %s749_s6 = inlined_call_operand.vmem [shape: f32[2,8,128], index: 6, kind: input, shape index: {}]   ;;  %s750_s7 = inlined_call_operand.vmem [shape: f32[2,8,128], index: 7, kind: output, shape index: {0}, may-alias: {1,7}]   ;;  %s751_s8 = inlined_call_operand.vmem [shape: f32[2,8,128], index: 8, kind: output, shape index: {1}, may-alias: {4,8}]  }
   0x1 LB: > { %s585_s28 = sadd.s32 4294967295, %s646_s27   ;;  %p587_p0 = scmp.ge.s32.totalorder %s646_s27, 1  ;;  %s646_s27 = sphi %s694_s27, %s20_s27  }
   0x2   : > { %p254_p1 = scmp.lt.s32.totalorder %s646_s27, 3  ;;  %s267_s9 = sshll.u32 %s743_s0, 4  ;;  %s268_s9 = int_to_ptr.vmem [resolvable:$true] %s267_s9 }
   0x3   : > { %p610_p3 = scmp.eq.s32.totalorder %s585_s28, 0  ;;  %s621_s11 = scalar_lea.vmem %s268_s9, 16 }
   0x4   : > { %p705_p2 = pnand %p587_p0, %p254_p1  ;;  %p622_p6 = scmp.ne.s32.totalorder %s268_s9, %s621_s11 }
   0x5   : > { %p629_p10 = scmp.lt.s32.totalorder %s268_s9, %s268_s9  ;;  %p630_p11 = scmp.lt.s32.totalorder %s621_s11, %s621_s11 }
   0x6   : > { %p606_p4 = pneg %p705_p2 }
   0x7   : > { %p631_p12 = por %p630_p11, %p629_p10 }
   0x8   : > { %p607_p5 = pnand %p610_p3, %p606_p4 }
   0xa   : > { %p623_p7 = pneg %p607_p5 }
   0xc   : > { %p624_p8 = pnand %p623_p7, %p622_p6 }
   0xe   : > { %p625_p9 = pneg %p624_p8 }
  0x10   : > { %p632_p13 = pnand %p631_p12, %p625_p9 }
  0x12   : > { %635 = shalt.err (!%p632_p13)
}
  0x13   : > { %s648_s12 = smov [#allocation2]   ;;  %322 = sbr.rel (%p705_p2) target bundleno = 44 (0x2c), region = 48 }
  0x14   : > { %609 = dma.vmem_to_smem (!%p607_p5), %s268_s9, 16, %s648_s12, [#allocation3]  }
  0x18   : > { %641 = dma.done.wait (%p610_p3), [#allocation3], 16  }
  0x19   : > { %643 = vsyncadd (%p610_p3), [#allocation3], 4294967280 }
  0x1a   : > { %328 = sfence }
  0x1b   : > { %p379_p0 = scmp.lt.s32.totalorder %s585_s28, 1  ;;  %s411_s13 = sld [smem:[#allocation2 + %s585_s28]] }
  0x1d   : > { %s754_s28 = smov (!%p379_p0, %s585_s28), 1 }
  0x1e   : > { %s592_s14 = sshll.u32 %s754_s28, 3 }
  0x1f   : > { %s386_s17 = scalar_lea.vmem %s745_s2, %s592_s14  ;;  %s390_s20 = scalar_lea.vmem %s746_s3, %s592_s14 }
  0x20   : > { %v414_v0 = vld [vmem:[%s386_s17] sm:$0xff]  ;;  %s382_s23 = scalar_lea.vmem %s744_s1, %s592_s14  ;;  %s398_s26 = scalar_lea.vmem %s748_s5, %s592_s14 }
  0x21   : > { %v413_v1 = vld [vmem:[%s390_s20] sm:$0xff]  ;;  %v415_v2 = vmul.f32 0.99, %v414_v0  ;;  %v417_v3 = vstv %s411_s13  ;;  %s402_s30 = scalar_lea.vmem %s749_s6, %s592_s14  ;;  %s394_s11 = scalar_lea.vmem %s747_s4, %s592_s14 }
  0x22   : > { %v423_v4 = vld [vmem:[%s398_s26] sm:$0xff]  ;;  %s406_s16 = scalar_lea.vmem %s750_s7, %s592_s14  ;;  %s410_s18 = scalar_lea.vmem %s751_s8, %s592_s14 }
  0x23   : > { %v416_v5 = vsub.f32 %v413_v1, %v415_v2  ;;  %v422_v6 = vld [vmem:[%s402_s30] sm:$0xff]  ;;  %v424_v7 = vmul.f32 0.99, %v423_v4 }
  0x24   : > { %v412_v8 = vld [vmem:[%s382_s23] sm:$0xff] }
  0x25   : > { %v418_v9 = vmul.f32 %v417_v3, %v416_v5  ;;  %v425_v10 = vsub.f32 %v422_v6, %v424_v7  ;;  %v421_v11 = vld [vmem:[%s394_s11] sm:$0xff] }
  0x27   : > { %v419_v12 = vadd.f32 %v418_v9, %v412_v8  ;;  %v426_v13 = vmul.f32 %v425_v10, %v417_v3 }
  0x29   : > { %420 = vst [vmem:[%s406_s16] sm:$0xff] %v419_v12  ;;  %v427_v14 = vadd.f32 %v426_v13, %v421_v11 }
  0x2b   : > { %428 = vst [vmem:[%s410_s18] sm:$0xff] %v427_v14 }
  0x2c PF: > { %s20_s27 = sadd.s32 1, %s646_s27  }
  0x2d   : > { %p17_p1 = scmp.ge.s32.totalorder %s20_s27, 4  }
  0x2f   :  { %19 = sbr.rel (!%p17_p1) target bundleno = 1 (0x1), region = 110 }
  0x34   :  { %462 = vsyncpa [#allocation3], 1 }
  0x35   :  { %464 = vsyncpa [#allocation3 + $0x1], 1 }

// kernel: gmed_training_step.3
= control target key start
LH: loop header
LB: loop body
LE: loop exit
PB: predicated region body
PF: predicated region fallthrough
CT: control target
= control target key end

     0   :  { %14 = vsyncpa [#allocation3], 0  ;;  %v1225_v47 = vmov 1983009808   ;;  %v41_v49 = vlaneseq  ;;  %vm123_vm0 = vcmask 1041408   ;;  %s2168_s0 = inlined_call_operand.vmem [shape: f32[2,1024], index: 0, kind: input, shape index: {}]   ;;  %s2169_s1 = inlined_call_operand.vmem [shape: f32[2,1024], index: 1, kind: input, shape index: {}]   ;;  %s2170_s2 = inlined_call_operand.vmem [shape: f32[2,1024], index: 2, kind: input, shape index: {}]   ;;  %s2171_s3 = inlined_call_operand.vmem [shape: f32[2,1024], index: 3, kind: input, shape index: {}]   ;;  %s2172_s4 = inlined_call_operand.vmem [shape: f32[1024,128], index: 4, kind: input, shape index: {}]   ;;  %s2173_s5 = inlined_call_operand.vmem [shape: f32[1024,128], index: 5, kind: input, shape index: {}]   ;;  %s2174_s6 = inlined_call_operand.vmem [shape: f32[1,128], index: 6, kind: input, shape index: {}]   ;;  %s2175_s7 = inlined_call_operand.hbm [shape: f32[4,128], index: 7, kind: output, shape index: {0}]   ;;  %s2176_s8 = inlined_call_operand.hbm [shape: f32[1,1], index: 8, kind: output, shape index: {1}]  }
   0x1   :  { %v470_v0 = vld [vmem:[%s2173_s5 + $0xf0] sm:$0xff]  ;;  %v471_v1 = vld [vmem:[%s2173_s5 + $0xf8] sm:$0xff]  ;;  %v468_v11 = vld [vmem:[%s2173_s5 + $0xe0] sm:$0xff]  ;;  %v39_v48 = vunpack.c.l.s4 %v1225_v47 }
   0x2   :  { %v502_v2 = vld [vmem:[%s2173_s5 + $0x1f0] sm:$0xff]  ;;  %v583_v3 = vpack.c.bf16 %v471_v1, %v470_v0  ;;  %v503_v4 = vld [vmem:[%s2173_s5 + $0x1f8] sm:$0xff]  ;;  %v469_v13 = vld [vmem:[%s2173_s5 + $0xe8] sm:$0xff]  ;;  %v42_v0 = vshrl.u32 %v41_v49, 7 }
   0x3   :  { %v454_v5 = vld [vmem:[%s2173_s5 + $0x70] sm:$0xff]  ;;  %v455_v6 = vld [vmem:[%s2173_s5 + $0x78] sm:$0xff]  ;;  %v599_v7 = vpack.c.bf16 %v503_v4, %v502_v2  ;;  %v500_v14 = vld [vmem:[%s2173_s5 + $0x1e0] sm:$0xff]  ;;  %v582_v16 = vpack.c.bf16 %v469_v13, %v468_v11  ;;  %v40_v63 = vunpack.c.0.s8 %v39_v48 }
   0x4   :  { %v575_v8 = vpack.c.bf16 %v455_v6, %v454_v5  ;;  %v486_v9 = vld [vmem:[%s2173_s5 + $0x170] sm:$0xff]  ;;  %v487_v10 = vld [vmem:[%s2173_s5 + $0x178] sm:$0xff]  ;;  %1004 = vmatprep.subr.bf16.mxu0 %v583_v3  ;;  %v501_v15 = vld [vmem:[%s2173_s5 + $0x1e8] sm:$0xff] }
   0x5   :  { %v591_v12 = vpack.c.bf16 %v487_v10, %v486_v9  ;;  %1026 = vmatprep.subr.bf16.mxu1 %v599_v7  ;;  %v598_v17 = vpack.c.bf16 %v501_v15, %v500_v14  ;;  %v452_v18 = vld [vmem:[%s2173_s5 + $0x60] sm:$0xff]  ;;  %v453_v19 = vld [vmem:[%s2173_s5 + $0x68] sm:$0xff]  ;;  %v466_v23 = vld [vmem:[%s2173_s5 + $0xd0] sm:$0xff]  ;;  %v1423_v13 = vsub.s32 %v40_v63, %v42_v0 }
   0x6   :  { %1005 = vmatpush3.bf16.msra.mxu0 %v575_v8  ;;  %v484_v20 = vld [vmem:[%s2173_s5 + $0x160] sm:$0xff]  ;;  %v574_v21 = vpack.c.bf16 %v453_v19, %v452_v18  ;;  %v485_v22 = vld [vmem:[%s2173_s5 + $0x168] sm:$0xff]  ;;  %v467_v24 = vld [vmem:[%s2173_s5 + $0xd8] sm:$0xff] }
   0x7   :  { %1027 = vmatpush3.bf16.msra.mxu1 %v591_v12  ;;  %1006 = vmatprep.subr.bf16.mxu0 %v582_v16  ;;  %v590_v25 = vpack.c.bf16 %v485_v22, %v484_v20  ;;  %v581_v26 = vpack.c.bf16 %v467_v24, %v466_v23  ;;  %v498_v27 = vld [vmem:[%s2173_s5 + $0x1d0] sm:$0xff]  ;;  %v499_v28 = vld [vmem:[%s2173_s5 + $0x1d8] sm:$0xff]  ;;  %v464_v35 = vld [vmem:[%s2173_s5 + $0xc0] sm:$0xff] }
   0x8   :  { %1028 = vmatprep.subr.bf16.mxu1 %v598_v17  ;;  %v450_v29 = vld [vmem:[%s2173_s5 + $0x50] sm:$0xff]  ;;  %v597_v30 = vpack.c.bf16 %v499_v28, %v498_v27  ;;  %v451_v31 = vld [vmem:[%s2173_s5 + $0x58] sm:$0xff]  ;;  %v465_v36 = vld [vmem:[%s2173_s5 + $0xc8] sm:$0xff] }
   0x9   :  { %v482_v32 = vld [vmem:[%s2173_s5 + $0x150] sm:$0xff]  ;;  %v483_v33 = vld [vmem:[%s2173_s5 + $0x158] sm:$0xff]  ;;  %v573_v34 = vpack.c.bf16 %v451_v31, %v450_v29  ;;  %v496_v37 = vld [vmem:[%s2173_s5 + $0x1c0] sm:$0xff]  ;;  %v580_v39 = vpack.c.bf16 %v465_v36, %v464_v35 }
   0xa   :  { %1007 = vmatpush3.bf16.msra.mxu0 %v574_v21  ;;  %v589_v38 = vpack.c.bf16 %v483_v33, %v482_v32  ;;  %v497_v40 = vld [vmem:[%s2173_s5 + $0x1c8] sm:$0xff]  ;;  %v448_v41 = vld [vmem:[%s2173_s5 + $0x40] sm:$0xff]  ;;  %v462_v46 = vld [vmem:[%s2173_s5 + $0xb0] sm:$0xff] }
   0xb   :  { %1029 = vmatpush3.bf16.msra.mxu1 %v590_v25  ;;  %1008 = vmatprep.subr.bf16.mxu0 %v581_v26  ;;  %v449_v42 = vld [vmem:[%s2173_s5 + $0x48] sm:$0xff]  ;;  %v596_v43 = vpack.c.bf16 %v497_v40, %v496_v37  ;;  %v480_v44 = vld [vmem:[%s2173_s5 + $0x140] sm:$0xff]  ;;  %v463_v50 = vld [vmem:[%s2173_s5 + $0xb8] sm:$0xff] }
   0xc   :  { %1030 = vmatprep.subr.bf16.mxu1 %v597_v30  ;;  %v481_v45 = vld [vmem:[%s2173_s5 + $0x148] sm:$0xff]  ;;  %v494_v51 = vld [vmem:[%s2173_s5 + $0x1b0] sm:$0xff]  ;;  %v495_v52 = vld [vmem:[%s2173_s5 + $0x1b8] sm:$0xff]  ;;  %v572_v53 = vpack.c.bf16 %v449_v42, %v448_v41  ;;  %v579_v55 = vpack.c.bf16 %v463_v50, %v462_v46 }
   0xd   :  { %v588_v54 = vpack.c.bf16 %v481_v45, %v480_v44  ;;  %v446_v56 = vld [vmem:[%s2173_s5 + $0x30] sm:$0xff]  ;;  %v447_v57 = vld [vmem:[%s2173_s5 + $0x38] sm:$0xff]  ;;  %v595_v59 = vpack.c.bf16 %v495_v52, %v494_v51  ;;  %v460_v61 = vld [vmem:[%s2173_s5 + $0xa0] sm:$0xff] }
   0xe   :  { %1009 = vmatpush3.bf16.msra.mxu0 %v573_v34  ;;  %v478_v58 = vld [vmem:[%s2173_s5 + $0x130] sm:$0xff]  ;;  %v479_v60 = vld [vmem:[%s2173_s5 + $0x138] sm:$0xff]  ;;  %v461_v62 = vld [vmem:[%s2173_s5 + $0xa8] sm:$0xff]  ;;  %v571_v3 = vpack.c.bf16 %v447_v57, %v446_v56 }
   0xf   :  { %1031 = vmatpush3.bf16.msra.mxu1 %v589_v38  ;;  %1010 = vmatprep.subr.bf16.mxu0 %v580_v39  ;;  %v492_v1 = vld [vmem:[%s2173_s5 + $0x1a0] sm:$0xff]  ;;  %v493_v2 = vld [vmem:[%s2173_s5 + $0x1a8] sm:$0xff]  ;;  %v587_v4 = vpack.c.bf16 %v479_v60, %v478_v58  ;;  %v578_v5 = vpack.c.bf16 %v461_v62, %v460_v61  ;;  %v458_v11 = vld [vmem:[%s2173_s5 + $0x90] sm:$0xff] }
  0x10   :  { %1032 = vmatprep.subr.bf16.mxu1 %v596_v43  ;;  %v444_v6 = vld [vmem:[%s2173_s5 + $0x20] sm:$0xff]  ;;  %v445_v7 = vld [vmem:[%s2173_s5 + $0x28] sm:$0xff]  ;;  %v594_v9 = vpack.c.bf16 %v493_v2, %v492_v1  ;;  %v459_v12 = vld [vmem:[%s2173_s5 + $0x98] sm:$0xff] }
  0x11   :  { %v476_v8 = vld [vmem:[%s2173_s5 + $0x120] sm:$0xff]  ;;  %v477_v10 = vld [vmem:[%s2173_s5 + $0x128] sm:$0xff]  ;;  %v490_v14 = vld [vmem:[%s2173_s5 + $0x190] sm:$0xff]  ;;  %v570_v16 = vpack.c.bf16 %v445_v7, %v444_v6  ;;  %v577_v20 = vpack.c.bf16 %v459_v12, %v458_v11 }
  0x12   :  { %1011 = vmatpush3.bf16.msra.mxu0 %v572_v53  ;;  %v491_v15 = vld [vmem:[%s2173_s5 + $0x198] sm:$0xff]  ;;  %v442_v17 = vld [vmem:[%s2173_s5 + $0x10] sm:$0xff]  ;;  %v586_v19 = vpack.c.bf16 %v477_v10, %v476_v8  ;;  %v140_v22 = vld [vmem:[%s2169_s1] sm:$0xff] }
  0x13   :  { %1033 = vmatpush3.bf16.msra.mxu1 %v588_v54  ;;  %1012 = vmatprep.subr.bf16.mxu0 %v579_v55  ;;  %v443_v18 = vld [vmem:[%s2173_s5 + $0x18] sm:$0xff]  ;;  %v474_v21 = vld [vmem:[%s2173_s5 + $0x110] sm:$0xff]  ;;  %v142_v23 = vld [vmem:[%s2171_s3] sm:$0xff]  ;;  %v593_v24 = vpack.c.bf16 %v491_v15, %v490_v14  ;;  %v153_v28 = vrot.slane %v140_v22, %v1423_v13  ;;  %v146_v30 = vcombine.high %v140_v22, %v140_v22 }
  0x14   :  { %1034 = vmatprep.subr.bf16.mxu1 %v595_v59  ;;  %v475_v25 = vld [vmem:[%s2173_s5 + $0x118] sm:$0xff]  ;;  %v456_v26 = vld [vmem:[%s2173_s5 + $0x80] sm:$0xff]  ;;  %v457_v27 = vld [vmem:[%s2173_s5 + $0x88] sm:$0xff]  ;;  %v190_v29 = vcombine.low %v142_v23, %v142_v23  ;;  %v204_v34 = vrot.slane %v142_v23, %v1423_v13  ;;  %v569_v35 = vpack.c.bf16 %v443_v18, %v442_v17 }
  0x15   :  { %v488_v31 = vld [vmem:[%s2173_s5 + $0x180] sm:$0xff]  ;;  %v489_v32 = vld [vmem:[%s2173_s5 + $0x188] sm:$0xff]  ;;  %v161_v39 = vcombine.high %v153_v28, %v153_v28  ;;  %v160_v41 = vrot.slane %v146_v30, %v1423_v13  ;;  %v585_v42 = vpack.c.bf16 %v475_v25, %v474_v21  ;;  %v576_v43 = vpack.c.bf16 %v457_v27, %v456_v26  ;;  %v534_v45 = vld [vmem:[%s2173_s5 + $0x2f0] sm:$0xff] }
  0x16   :  { %1013 = vmatpush3.bf16.msra.mxu0 %v571_v3  ;;  %v440_v33 = vld [vmem:[%s2173_s5] sm:$0xff]  ;;  %v441_v36 = vld [vmem:[%s2173_s5 + $0x8] sm:$0xff]  ;;  %v197_v40 = vrot.slane %v190_v29, %v1423_v13  ;;  %v206_v44 = vcombine.high %v204_v34, %v204_v34  ;;  %v535_v46 = vld [vmem:[%s2173_s5 + $0x2f8] sm:$0xff]  ;;  %v592_v47 = vpack.c.bf16 %v489_v32, %v488_v31 }
  0x17   :  { %1035 = vmatpush3.bf16.msra.mxu1 %v587_v4  ;;  %1014 = vmatprep.subr.bf16.mxu0 %v578_v5  ;;  %v472_v37 = vld [vmem:[%s2173_s5 + $0x100] sm:$0xff]  ;;  %v473_v38 = vld [vmem:[%s2173_s5 + $0x108] sm:$0xff]  ;;  %v162_v49 = vcombine.high %v160_v41, %v160_v41  ;;  %v568_v50 = vpack.c.bf16 %v441_v36, %v440_v33  ;;  %v566_v52 = vld [vmem:[%s2173_s5 + $0x3f0] sm:$0xff]  ;;  %v615_v57 = vpack.c.bf16 %v535_v46, %v534_v45 }
  0x18   :  { %1036 = vmatprep.subr.bf16.mxu1 %v594_v9  ;;  %v205_v48 = vcombine.high %v197_v40, %v197_v40  ;;  %v584_v51 = vpack.c.bf16 %v473_v38, %v472_v37  ;;  %v567_v53 = vld [vmem:[%s2173_s5 + $0x3f8] sm:$0xff]  ;;  %v232_v56 = vsel %vm123_vm0, %v153_v28, %v197_v40  ;;  %v234_v60 = vsel %vm123_vm0, %v160_v41, %v204_v34  ;;  %v518_v61 = vld [vmem:[%s2173_s5 + $0x270] sm:$0xff]  ;;  %v532_v2 = vld [vmem:[%s2173_s5 + $0x2e0] sm:$0xff] }
  0x19   :  { %v235_v55 = vsel %vm123_vm0, %v162_v49, %v206_v44  ;;  %v519_v62 = vld [vmem:[%s2173_s5 + $0x278] sm:$0xff]  ;;  %v550_v63 = vld [vmem:[%s2173_s5 + $0x370] sm:$0xff]  ;;  %v631_v0 = vpack.c.bf16 %v567_v53, %v566_v52  ;;  %v533_v3 = vld [vmem:[%s2173_s5 + $0x2e8] sm:$0xff]  ;;  %v240_v4 = vpack.c.bf16 %v232_v56, %v232_v56  ;;  %v242_v7 = vpack.c.bf16 %v234_v60, %v234_v60 }
  0x1a   :  { %1015 = vmatpush3.bf16.msra.mxu0 %v570_v16  ;;  %v233_v54 = vsel %vm123_vm0, %v161_v39, %v205_v48  ;;  %v243_v59 = vpack.c.bf16 %v235_v55, %v235_v55  ;;  %v551_v1 = vld [vmem:[%s2173_s5 + $0x378] sm:$0xff]  ;;  %v564_v5 = vld [vmem:[%s2173_s5 + $0x3e0] sm:$0xff]  ;;  %v565_v6 = vld [vmem:[%s2173_s5 + $0x3e8] sm:$0xff]  ;;  %v607_v8 = vpack.c.bf16 %v519_v62, %v518_v61  ;;  %v614_v10 = vpack.c.bf16 %v533_v3, %v532_v2 }
  0x1b   :  { %1037 = vmatpush3.bf16.msra.mxu1 %v586_v19  ;;  %1016 = vmatprep.subr.bf16.mxu0 %v577_v20  ;;  %v241_v58 = vpack.c.bf16 %v233_v54, %v233_v54  ;;  %v623_v9 = vpack.c.bf16 %v551_v1, %v550_v63  ;;  %v516_v11 = vld [vmem:[%s2173_s5 + $0x260] sm:$0xff]  ;;  %v517_v12 = vld [vmem:[%s2173_s5 + $0x268] sm:$0xff]  ;;  %v630_v15 = vpack.c.bf16 %v565_v6, %v564_v5  ;;  %v530_v17 = vld [vmem:[%s2173_s5 + $0x2d0] sm:$0xff] }
  0x1c   :  { %1038 = vmatprep.subr.bf16.mxu1 %v593_v24  ;;  %704 = vmatprep.mubr.bf16.mxu1 %v243_v59  ;;  %v548_v14 = vld [vmem:[%s2173_s5 + $0x360] sm:$0xff]  ;;  %v549_v16 = vld [vmem:[%s2173_s5 + $0x368] sm:$0xff]  ;;  %v531_v18 = vld [vmem:[%s2173_s5 + $0x2d8] sm:$0xff]  ;;  %v606_v21 = vpack.c.bf16 %v517_v12, %v516_v11 }
  0x1d   :  { %664 = vmatprep.mubr.bf16.mxu0 %v241_v58  ;;  %v562_v19 = vld [vmem:[%s2173_s5 + $0x3d0] sm:$0xff]  ;;  %v563_v20 = vld [vmem:[%s2173_s5 + $0x3d8] sm:$0xff]  ;;  %v622_v22 = vpack.c.bf16 %v549_v16, %v548_v14  ;;  %v613_v23 = vpack.c.bf16 %v531_v18, %v530_v17  ;;  %v528_v29 = vld [vmem:[%s2173_s5 + $0x2c0] sm:$0xff] }
  0x1e   :  { %1017 = vmatpush3.bf16.msra.mxu0 %v569_v35  ;;  %v514_v24 = vld [vmem:[%s2173_s5 + $0x250] sm:$0xff]  ;;  %v515_v25 = vld [vmem:[%s2173_s5 + $0x258] sm:$0xff]  ;;  %v629_v27 = vpack.c.bf16 %v563_v20, %v562_v19  ;;  %v529_v30 = vld [vmem:[%s2173_s5 + $0x2c8] sm:$0xff] }
  0x1f   :  { %1039 = vmatpush3.bf16.msra.mxu1 %v585_v42  ;;  %1018 = vmatprep.subr.bf16.mxu0 %v576_v43  ;;  %v546_v26 = vld [vmem:[%s2173_s5 + $0x350] sm:$0xff]  ;;  %v547_v28 = vld [vmem:[%s2173_s5 + $0x358] sm:$0xff]  ;;  %v560_v31 = vld [vmem:[%s2173_s5 + $0x3c0] sm:$0xff]  ;;  %v605_v33 = vpack.c.bf16 %v515_v25, %v514_v24  ;;  %v612_v36 = vpack.c.bf16 %v529_v30, %v528_v29 }
  0x20   :  { %1040 = vmatprep.subr.bf16.mxu1 %v592_v47  ;;  %v561_v32 = vld [vmem:[%s2173_s5 + $0x3c8] sm:$0xff]  ;;  %v512_v34 = vld [vmem:[%s2173_s5 + $0x240] sm:$0xff]  ;;  %v621_v35 = vpack.c.bf16 %v547_v28, %v546_v26  ;;  %v526_v41 = vld [vmem:[%s2173_s5 + $0x2b0] sm:$0xff] }
  0x21   :  { %v513_v37 = vld [vmem:[%s2173_s5 + $0x248] sm:$0xff]  ;;  %v544_v38 = vld [vmem:[%s2173_s5 + $0x340] sm:$0xff]  ;;  %v628_v40 = vpack.c.bf16 %v561_v32, %v560_v31  ;;  %v527_v42 = vld [vmem:[%s2173_s5 + $0x2b8] sm:$0xff] }
  0x22   :  { %1019 = vmatpush3.bf16.msra.mxu0 %v568_v50  ;;  %v545_v39 = vld [vmem:[%s2173_s5 + $0x348] sm:$0xff]  ;;  %v558_v43 = vld [vmem:[%s2173_s5 + $0x3b0] sm:$0xff]  ;;  %v559_v44 = vld [vmem:[%s2173_s5 + $0x3b8] sm:$0xff]  ;;  %v604_v47 = vpack.c.bf16 %v513_v37, %v512_v34  ;;  %v611_v52 = vpack.c.bf16 %v527_v42, %v526_v41 }
  0x23   :  { %1041 = vmatpush3.bf16.msra.mxu1 %v584_v51  ;;  %1048 = vmatprep.subr.bf16.mxu0 %v615_v57  ;;  %v141_v45 = vld [vmem:[%s2169_s1 + $0x8] sm:$0xff]  ;;  %v620_v51 = vpack.c.bf16 %v545_v39, %v544_v38  ;;  %v510_v53 = vld [vmem:[%s2173_s5 + $0x230] sm:$0xff]  ;;  %v511_v54 = vld [vmem:[%s2173_s5 + $0x238] sm:$0xff]  ;;  %v627_v57 = vpack.c.bf16 %v559_v44, %v558_v43 }
  0x24   :  { %1070 = vmatprep.subr.bf16.mxu1 %v631_v0  ;;  %v143_v46 = vld [vmem:[%s2171_s3 + $0x8] sm:$0xff]  ;;  %v1596_v48 = vrot.slane %v141_v45, %v1423_v13  ;;  %v163_v50 = vcombine.high %v141_v45, %v141_v45  ;;  %v542_v55 = vld [vmem:[%s2173_s5 + $0x330] sm:$0xff]  ;;  %v543_v58 = vld [vmem:[%s2173_s5 + $0x338] sm:$0xff]  ;;  %v603_v3 = vpack.c.bf16 %v511_v54, %v510_v53 }
  0x25   :  { %665 = vmatmul.mubr.bf16.vlgmr.msra.gmra.mxu0 %v240_v4  ;;  %v207_v49 = vcombine.low %v143_v46, %v143_v46  ;;  %v1608_v56 = vrot.slane %v143_v46, %v1423_v13  ;;  %v524_v59 = vld [vmem:[%s2173_s5 + $0x2a0] sm:$0xff]  ;;  %v525_v60 = vld [vmem:[%s2173_s5 + $0x2a8] sm:$0xff]  ;;  %v619_v6 = vpack.c.bf16 %v543_v58, %v542_v55  ;;  %v522_v14 = vld [vmem:[%s2173_s5 + $0x290] sm:$0xff] }
  0x26   :  { %705 = vmatmul.mubr.bf16.vlgmr.msra.gmra.mxu1 %v242_v7  ;;  %1049 = vmatpush3.bf16.msra.mxu0 %v607_v8  ;;  %v178_v61 = vcombine.high %v1596_v48, %v1596_v48  ;;  %v1625_v63 = vrot.slane %v163_v50, %v1423_v13  ;;  %v556_v0 = vld [vmem:[%s2173_s5 + $0x3a0] sm:$0xff]  ;;  %v557_v1 = vld [vmem:[%s2173_s5 + $0x3a8] sm:$0xff]  ;;  %v610_v7 = vpack.c.bf16 %v525_v60, %v524_v59  ;;  %v554_v18 = vld [vmem:[%s2173_s5 + $0x390] sm:$0xff] }
  0x27   :  { %1071 = vmatpush3.bf16.msra.mxu1 %v623_v9  ;;  %1050 = vmatprep.subr.bf16.mxu0 %v614_v10  ;;  %v1622_v62 = vrot.slane %v207_v49, %v1423_v13  ;;  %v223_v2 = vcombine.high %v1608_v56, %v1608_v56  ;;  %v508_v8 = vld [vmem:[%s2173_s5 + $0x220] sm:$0xff]  ;;  %v509_v9 = vld [vmem:[%s2173_s5 + $0x228] sm:$0xff]  ;;  %v626_v11 = vpack.c.bf16 %v557_v1, %v556_v0  ;;  %v555_v19 = vld [vmem:[%s2173_s5 + $0x398] sm:$0xff] }
  0x28   :  { %1072 = vmatprep.subr.bf16.mxu1 %v630_v15  ;;  %v179_v5 = vcombine.high %v1625_v63, %v1625_v63  ;;  %v540_v10 = vld [vmem:[%s2173_s5 + $0x320] sm:$0xff]  ;;  %v541_v12 = vld [vmem:[%s2173_s5 + $0x328] sm:$0xff]  ;;  %v523_v15 = vld [vmem:[%s2173_s5 + $0x298] sm:$0xff]  ;;  %v625_v28 = vpack.c.bf16 %v555_v19, %v554_v18  ;;  %v238_v50 = vsel %vm123_vm0, %v1625_v63, %v1608_v56 }
  0x29   :  { %v222_v4 = vcombine.high %v1622_v62, %v1622_v62  ;;  %v609_v24 = vpack.c.bf16 %v523_v15, %v522_v14  ;;  %v506_v25 = vld [vmem:[%s2173_s5 + $0x210] sm:$0xff]  ;;  %v507_v26 = vld [vmem:[%s2173_s5 + $0x218] sm:$0xff]  ;;  %v520_v30 = vld [vmem:[%s2173_s5 + $0x280] sm:$0xff] }
  0x2a   :  { %1051 = vmatpush3.bf16.msra.mxu0 %v606_v21  ;;  %v239_v17 = vsel %vm123_vm0, %v179_v5, %v223_v2  ;;  %v539_v29 = vld [vmem:[%s2173_s5 + $0x318] sm:$0xff]  ;;  %v521_v31 = vld [vmem:[%s2173_s5 + $0x288] sm:$0xff]  ;;  %v552_v32 = vld [vmem:[%s2173_s5 + $0x380] sm:$0xff]  ;;  %v601_v34 = vpack.c.bf16 %v507_v26, %v506_v25 }
  0x2b   :  { %1073 = vmatpush3.bf16.msra.mxu1 %v622_v22  ;;  %1052 = vmatprep.subr.bf16.mxu0 %v613_v23  ;;  %v237_v16 = vsel %vm123_vm0, %v178_v61, %v222_v4  ;;  %v247_v21 = vpack.c.bf16 %v239_v17, %v239_v17  ;;  %v602_v22 = vpack.c.bf16 %v509_v9, %v508_v8  ;;  %v504_v37 = vld [vmem:[%s2173_s5 + $0x200] sm:$0xff]  ;;  %v505_v38 = vld [vmem:[%s2173_s5 + $0x208] sm:$0xff]  ;;  %v278_v42 = vld [vmem:[%s2172_s4 + $0xf0] sm:$0xff] }
  0x2c   :  { %1074 = vmatprep.subr.bf16.mxu1 %v629_v27  ;;  %v245_v20 = vpack.c.bf16 %v237_v16, %v237_v16  ;;  %v618_v23 = vpack.c.bf16 %v541_v12, %v540_v10  ;;  %v538_v27 = vld [vmem:[%s2173_s5 + $0x310] sm:$0xff]  ;;  %v536_v39 = vld [vmem:[%s2173_s5 + $0x300] sm:$0xff]  ;;  %v537_v41 = vld [vmem:[%s2173_s5 + $0x308] sm:$0xff]  ;;  %v600_v46 = vpack.c.bf16 %v505_v38, %v504_v37  ;;  %v246_v61 = vpack.c.bf16 %v238_v50, %v238_v50 }
  0x2d   :  { %784 = vmatprep.mubr.bf16.mxu1 %v247_v21  ;;  %v279_v43 = vld [vmem:[%s2172_s4 + $0xf8] sm:$0xff]  ;;  %v310_v44 = vld [vmem:[%s2172_s4 + $0x1f0] sm:$0xff]  ;;  %v616_v49 = vpack.c.bf16 %v537_v41, %v536_v39  ;;  %v276_v56 = vld [vmem:[%s2172_s4 + $0xe0] sm:$0xff] }
  0x2e   :  { %1053 = vmatpush3.bf16.msra.mxu0 %v605_v33  ;;  %744 = vmatprep.mubr.bf16.mxu0 %v245_v20  ;;  %v553_v33 = vld [vmem:[%s2173_s5 + $0x388] sm:$0xff]  ;;  %v311_v45 = vld [vmem:[%s2172_s4 + $0x1f8] sm:$0xff]  ;;  %v308_v59 = vld [vmem:[%s2172_s4 + $0x1e0] sm:$0xff] }
  0x2f   :  { %1075 = vmatpush3.bf16.msra.mxu1 %v621_v35  ;;  %1054 = vmatprep.subr.bf16.mxu0 %v612_v36  ;;  %v617_v35 = vpack.c.bf16 %v539_v29, %v538_v27  ;;  %v608_v36 = vpack.c.bf16 %v521_v31, %v520_v30  ;;  %v263_v53 = vld [vmem:[%s2172_s4 + $0x78] sm:$0xff]  ;;  %v407_v54 = vpack.c.bf16 %v311_v45, %v310_v44  ;;  %v309_v60 = vld [vmem:[%s2172_s4 + $0x1e8] sm:$0xff]  ;;  %v260_v63 = vld [vmem:[%s2172_s4 + $0x60] sm:$0xff] }
  0x30   :  { %1076 = vmatprep.subr.bf16.mxu1 %v628_v40  ;;  %v624_v40 = vpack.c.bf16 %v553_v33, %v552_v32  ;;  %v295_v55 = vld [vmem:[%s2172_s4 + $0x178] sm:$0xff]  ;;  %v261_v0 = vld [vmem:[%s2172_s4 + $0x68] sm:$0xff]  ;;  %v31_v4 = vld [vmem:[%s2168_s0] sm:$0xff] }
  0x31   :  { %v33_v5 = vld [vmem:[%s2170_s2] sm:$0xff]  ;;  %v274_v8 = vld [vmem:[%s2172_s4 + $0xd0] sm:$0xff]  ;;  %v275_v9 = vld [vmem:[%s2172_s4 + $0xd8] sm:$0xff]  ;;  %v1768_v10 = vrot.slane %v31_v4, %v1423_v13  ;;  %v37_v12 = vcombine.high %v31_v4, %v31_v4  ;;  %v382_v14 = vpack.c.bf16 %v261_v0, %v260_v63 }
  0x32   :  { %1055 = vmatpush3.bf16.msra.mxu0 %v604_v47  ;;  %v236_v47 = vsel %vm123_vm0, %v1596_v48, %v1622_v62  ;;  %v294_v48 = vld [vmem:[%s2172_s4 + $0x170] sm:$0xff]  ;;  %v307_v16 = vld [vmem:[%s2172_s4 + $0x1d8] sm:$0xff]  ;;  %v1777_v17 = vrot.slane %v33_v5, %v1423_v13  ;;  %v272_v29 = vld [vmem:[%s2172_s4 + $0xc0] sm:$0xff] }
  0x33   :  { %1077 = vmatpush3.bf16.msra.mxu1 %v620_v51  ;;  %1056 = vmatprep.subr.bf16.mxu0 %v611_v52  ;;  %v391_v51 = vpack.c.bf16 %v279_v43, %v278_v42  ;;  %v262_v52 = vld [vmem:[%s2172_s4 + $0x70] sm:$0xff]  ;;  %v244_v58 = vpack.c.bf16 %v236_v47, %v236_v47  ;;  %v399_v1 = vpack.c.bf16 %v295_v55, %v294_v48  ;;  %v291_v26 = vld [vmem:[%s2172_s4 + $0x158] sm:$0xff]  ;;  %v273_v30 = vld [vmem:[%s2172_s4 + $0xc8] sm:$0xff] }
  0x34   :  { %1078 = vmatprep.subr.bf16.mxu1 %v627_v57  ;;  %v277_v57 = vld [vmem:[%s2172_s4 + $0xe8] sm:$0xff]  ;;  %v383_v62 = vpack.c.bf16 %v263_v53, %v262_v52  ;;  %v306_v15 = vld [vmem:[%s2172_s4 + $0x1d0] sm:$0xff]  ;;  %v52_v19 = vcombine.high %v1768_v10, %v1768_v10  ;;  %v1788_v21 = vrot.slane %v37_v12, %v1423_v13  ;;  %v97_v27 = vcombine.high %v1777_v17, %v1777_v17  ;;  %v304_v33 = vld [vmem:[%s2172_s4 + $0x1c0] sm:$0xff] }
  0x35   :  { %v390_v2 = vpack.c.bf16 %v277_v57, %v276_v56  ;;  %v258_v18 = vld [vmem:[%s2172_s4 + $0x50] sm:$0xff]  ;;  %v388_v39 = vpack.c.bf16 %v273_v30, %v272_v29  ;;  %v257_v41 = vld [vmem:[%s2172_s4 + $0x48] sm:$0xff]  ;;  %v288_v42 = vld [vmem:[%s2172_s4 + $0x140] sm:$0xff] }
  0x36   :  { %1057 = vmatpush3.bf16.msra.mxu0 %v603_v3  ;;  %v292_v3 = vld [vmem:[%s2172_s4 + $0x160] sm:$0xff]  ;;  %v290_v25 = vld [vmem:[%s2172_s4 + $0x150] sm:$0xff]  ;;  %v53_v32 = vcombine.high %v1788_v21, %v1788_v21  ;;  %v255_v55 = vld [vmem:[%s2172_s4 + $0x38] sm:$0xff] }
  0x37   :  { %1079 = vmatpush3.bf16.msra.mxu1 %v619_v6  ;;  %1058 = vmatprep.subr.bf16.mxu0 %v610_v7  ;;  %v406_v6 = vpack.c.bf16 %v309_v60, %v308_v59  ;;  %v293_v7 = vld [vmem:[%s2172_s4 + $0x168] sm:$0xff]  ;;  %v270_v47 = vld [vmem:[%s2172_s4 + $0xb0] sm:$0xff]  ;;  %v268_v59 = vld [vmem:[%s2172_s4 + $0xa0] sm:$0xff] }
  0x38   :  { %1080 = vmatprep.subr.bf16.mxu1 %v626_v11  ;;  %v81_v11 = vcombine.low %v33_v5, %v33_v5  ;;  %v127_v38 = vsel %vm123_vm0, %v53_v32, %v97_v27  ;;  %v302_v50 = vld [vmem:[%s2172_s4 + $0x1b0] sm:$0xff]  ;;  %v269_v60 = vld [vmem:[%s2172_s4 + $0xa8] sm:$0xff]  ;;  %v284_v4 = vld [vmem:[%s2172_s4 + $0x120] sm:$0xff] }
  0x39   :  { %v135_v44 = vpack.c.bf16 %v127_v38, %v127_v38  ;;  %v286_v56 = vld [vmem:[%s2172_s4 + $0x130] sm:$0xff]  ;;  %v297_v27 = vld [vmem:[%s2172_s4 + $0x188] sm:$0xff] }
  0x3a   :  { %1059 = vmatpush3.bf16.msra.mxu0 %v602_v22  ;;  %v1785_v20 = vrot.slane %v81_v11, %v1423_v13  ;;  %v398_v22 = vpack.c.bf16 %v293_v7, %v292_v3  ;;  %v253_v3 = vld [vmem:[%s2172_s4 + $0x28] sm:$0xff]  ;;  %v266_v7 = vld [vmem:[%s2172_s4 + $0x90] sm:$0xff]  ;;  %v299_v11 = vld [vmem:[%s2172_s4 + $0x198] sm:$0xff] }
  0x3b   :  { %1081 = vmatpush3.bf16.msra.mxu1 %v618_v23  ;;  %1060 = vmatprep.subr.bf16.mxu0 %v609_v24  ;;  %v389_v23 = vpack.c.bf16 %v275_v9, %v274_v8  ;;  %v259_v24 = vld [vmem:[%s2172_s4 + $0x58] sm:$0xff]  ;;  %v298_v9 = vld [vmem:[%s2172_s4 + $0x190] sm:$0xff]  ;;  %v34_v29 = vld [vmem:[%s2170_s2 + $0x8] sm:$0xff] }
  0x3c   :  { %1082 = vmatprep.subr.bf16.mxu1 %v625_v28  ;;  %v405_v28 = vpack.c.bf16 %v307_v16, %v306_v15  ;;  %v96_v31 = vcombine.high %v1785_v20, %v1785_v20  ;;  %v267_v8 = vld [vmem:[%s2172_s4 + $0x98] sm:$0xff]  ;;  %v249_v32 = vld [vmem:[%s2172_s4 + $0x8] sm:$0xff] }
  0x3d   :  { %v385_v16 = vpack.c.bf16 %v267_v8, %v266_v7 }
  0x3e   :  { %1061 = vmatpush3.bf16.msra.mxu0 %v601_v34  ;;  %v305_v34 = vld [vmem:[%s2172_s4 + $0x1c8] sm:$0xff]  ;;  %v125_v37 = vsel %vm123_vm0, %v52_v19, %v96_v31  ;;  %v282_v19 = vld [vmem:[%s2172_s4 + $0x110] sm:$0xff]  ;;  %v248_v31 = vld [vmem:[%s2172_s4] sm:$0xff] }
  0x3f   :  { %1083 = vmatpush3.bf16.msra.mxu1 %v617_v35  ;;  %1062 = vmatprep.subr.bf16.mxu0 %v608_v36  ;;  %v381_v35 = vpack.c.bf16 %v259_v24, %v258_v18  ;;  %v397_v36 = vpack.c.bf16 %v291_v26, %v290_v25  ;;  %v133_v43 = vpack.c.bf16 %v125_v37, %v125_v37  ;;  %v251_v18 = vld [vmem:[%s2172_s4 + $0x18] sm:$0xff]  ;;  %v264_v24 = vld [vmem:[%s2172_s4 + $0x80] sm:$0xff]  ;;  %v265_v25 = vld [vmem:[%s2172_s4 + $0x88] sm:$0xff] }
  0x40   :  { %1084 = vmatprep.subr.bf16.mxu1 %v624_v40  ;;  %v256_v40 = vld [vmem:[%s2172_s4 + $0x40] sm:$0xff]  ;;  %v404_v45 = vpack.c.bf16 %v305_v34, %v304_v33  ;;  %v98_v34 = vcombine.low %v34_v29, %v34_v29 }
  0x41   :  { %v380_v52 = vpack.c.bf16 %v257_v41, %v256_v40  ;;  %v296_v26 = vld [vmem:[%s2172_s4 + $0x180] sm:$0xff] }
  0x42   :  { %1063 = vmatpush3.bf16.msra.mxu0 %v600_v46  ;;  %v289_v46 = vld [vmem:[%s2172_s4 + $0x148] sm:$0xff] }
  0x43   :  { %1085 = vmatpush3.bf16.msra.mxu1 %v616_v49  ;;  %1092 = vmatprep.subr.bf16.mxu0 %v391_v51  ;;  %v271_v49 = vld [vmem:[%s2172_s4 + $0xb8] sm:$0xff]  ;;  %v396_v53 = vpack.c.bf16 %v289_v46, %v288_v42 }
  0x44   :  { %1114 = vmatprep.subr.bf16.mxu1 %v407_v54  ;;  %v303_v51 = vld [vmem:[%s2172_s4 + $0x1b8] sm:$0xff]  ;;  %v387_v48 = vpack.c.bf16 %v271_v49, %v270_v47  ;;  %v254_v54 = vld [vmem:[%s2172_s4 + $0x30] sm:$0xff] }
  0x45   :  { %745 = vmatmul.mubr.bf16.vlgmr.msra.gmra.mxu0 %v244_v58  ;;  %v403_v57 = vpack.c.bf16 %v303_v51, %v302_v50  ;;  %v287_v58 = vld [vmem:[%s2172_s4 + $0x138] sm:$0xff]  ;;  %v379_v63 = vpack.c.bf16 %v255_v55, %v254_v54 }
  0x46   :  { %785 = vmatmul.mubr.bf16.vlgmr.msra.gmra.mxu1 %v246_v61  ;;  %1093 = vmatpush3.bf16.msra.mxu0 %v383_v62  ;;  %v300_v61 = vld [vmem:[%s2172_s4 + $0x1a0] sm:$0xff]  ;;  %v301_v62 = vld [vmem:[%s2172_s4 + $0x1a8] sm:$0xff]  ;;  %v395_v0 = vpack.c.bf16 %v287_v58, %v286_v56 }
  0x47   :  { %1115 = vmatpush3.bf16.msra.mxu1 %v399_v1  ;;  %1094 = vmatprep.subr.bf16.mxu0 %v390_v2  ;;  %v386_v1 = vpack.c.bf16 %v269_v60, %v268_v59  ;;  %v252_v2 = vld [vmem:[%s2172_s4 + $0x20] sm:$0xff]  ;;  %v402_v5 = vpack.c.bf16 %v301_v62, %v300_v61 }
  0x48   :  { %1116 = vmatprep.subr.bf16.mxu1 %v406_v6  ;;  %824 = vmatprep.mubr.bf16.mxu0 %v133_v43  ;;  %v285_v6 = vld [vmem:[%s2172_s4 + $0x128] sm:$0xff]  ;;  %v378_v12 = vpack.c.bf16 %v253_v3, %v252_v2 }
  0x49   :  { %864 = vmatprep.mubr.bf16.mxu1 %v135_v44  ;;  %v394_v15 = vpack.c.bf16 %v285_v6, %v284_v4 }
  0x4a   :  { %1095 = vmatpush3.bf16.msra.mxu0 %v382_v14  ;;  %v250_v14 = vld [vmem:[%s2172_s4 + $0x10] sm:$0xff] }
  0x4b   :  { %1117 = vmatpush3.bf16.msra.mxu1 %v398_v22  ;;  %1096 = vmatprep.subr.bf16.mxu0 %v389_v23  ;;  %v283_v22 = vld [vmem:[%s2172_s4 + $0x118] sm:$0xff]  ;;  %v401_v23 = vpack.c.bf16 %v299_v11, %v298_v9  ;;  %v377_v30 = vpack.c.bf16 %v251_v18, %v250_v14 }
  0x4c   :  { %1118 = vmatprep.subr.bf16.mxu1 %v405_v28  ;;  %v32_v28 = vld [vmem:[%s2168_s0 + $0x8] sm:$0xff] }
  0x4d   :  { %v1928_v33 = vrot.slane %v32_v28, %v1423_v13 }
  0x4e   :  { %1097 = vmatpush3.bf16.msra.mxu0 %v381_v35  ;;  %v54_v35 = vcombine.high %v32_v28, %v32_v28 }
  0x4f   :  { %1119 = vmatpush3.bf16.msra.mxu1 %v397_v36  ;;  %1098 = vmatprep.subr.bf16.mxu0 %v388_v39 }
  0x50   :  { %1120 = vmatprep.subr.bf16.mxu1 %v404_v45 }
  0x52   :  { %1099 = vmatpush3.bf16.msra.mxu0 %v380_v52 }
  0x53   :  { %1121 = vmatpush3.bf16.msra.mxu1 %v396_v53  ;;  %1100 = vmatprep.subr.bf16.mxu0 %v387_v48 }
  0x54   :  { %1122 = vmatprep.subr.bf16.mxu1 %v403_v57 }
  0x56   :  { %1101 = vmatpush3.bf16.msra.mxu0 %v379_v63 }
  0x57   :  { %1123 = vmatpush3.bf16.msra.mxu1 %v395_v0  ;;  %1102 = vmatprep.subr.bf16.mxu0 %v386_v1 }
  0x58   :  { %1124 = vmatprep.subr.bf16.mxu1 %v402_v5 }
  0x5a   :  { %1103 = vmatpush3.bf16.msra.mxu0 %v378_v12 }
  0x5b   :  { %15 = vsyncpa [#allocation4], 0  ;;  %1125 = vmatpush3.bf16.msra.mxu1 %v394_v15  ;;  %1104 = vmatprep.subr.bf16.mxu0 %v385_v16  ;;  %v393_v36 = vpack.c.bf16 %v283_v22, %v282_v19  ;;  %v384_v37 = vpack.c.bf16 %v265_v25, %v264_v24  ;;  %v280_v38 = vld [vmem:[%s2172_s4 + $0x100] sm:$0xff]  ;;  %v1934_v39 = vrot.slane %v34_v29, %v1423_v13  ;;  %v281_v41 = vld [vmem:[%s2172_s4 + $0x108] sm:$0xff]  ;;  %vm962_vm1 = vcmask 257024   ;;  %s1226_s26 = smov [#allocation2]  }
  0x5c   :  { %1126 = vmatprep.subr.bf16.mxu1 %v401_v23  ;;  %v400_v40 = vpack.c.bf16 %v297_v27, %v296_v26  ;;  %v342_v42 = vld [vmem:[%s2172_s4 + $0x2f0] sm:$0xff]  ;;  %v343_v43 = vld [vmem:[%s2172_s4 + $0x2f8] sm:$0xff]  ;;  %v1946_v44 = vrot.slane %v98_v34, %v1423_v13  ;;  %v1949_v45 = vrot.slane %v54_v35, %v1423_v13  ;;  %v376_v46 = vpack.c.bf16 %v249_v32, %v248_v31  ;;  %v372_v60 = vld [vmem:[%s2172_s4 + $0x3e0] sm:$0xff]  ;;  %s982_s27 = sshll.u32 %s1226_s26, 4  ;;  %s983_s27 = int_to_ptr.vmem [resolvable:$true] %s982_s27 }
  0x5d   :  { %v374_v47 = vld [vmem:[%s2172_s4 + $0x3f0] sm:$0xff]  ;;  %v375_v49 = vld [vmem:[%s2172_s4 + $0x3f8] sm:$0xff]  ;;  %v69_v50 = vcombine.high %v1928_v33, %v1928_v33  ;;  %v124_v51 = vsel %vm123_vm0, %v1768_v10, %v1785_v20  ;;  %v114_v53 = vcombine.high %v1934_v39, %v1934_v39  ;;  %v392_v48 = vpack.c.bf16 %v281_v41, %v280_v38  ;;  %v373_v61 = vld [vmem:[%s2172_s4 + $0x3e8] sm:$0xff]  ;;  %s1193_s0 = scalar_lea.vmem %s983_s27, 64  ;;  %p1198_p1 = scmp.lt.s32.totalorder %s983_s27, %s983_s27 }
  0x5e   :  { %1105 = vmatpush3.bf16.msra.mxu0 %v377_v30  ;;  %v113_v13 = vcombine.high %v1946_v44, %v1946_v44  ;;  %v70_v52 = vcombine.high %v1949_v45, %v1949_v45  ;;  %v126_v54 = vsel %vm123_vm0, %v1788_v21, %v1777_v17  ;;  %v423_v55 = vpack.c.bf16 %v343_v43, %v342_v42  ;;  %v326_v10 = vld [vmem:[%s2172_s4 + $0x270] sm:$0xff]  ;;  %v327_v20 = vld [vmem:[%s2172_s4 + $0x278] sm:$0xff]  ;;  %v340_v17 = vld [vmem:[%s2172_s4 + $0x2e0] sm:$0xff]  ;;  %p1194_p0 = scmp.ne.s32.totalorder %s983_s27, %s1193_s0  ;;  %p1199_p2 = scmp.lt.s32.totalorder %s1193_s0, %s1193_s0 }
  0x5f   :  { %1127 = vmatpush3.bf16.msra.mxu1 %v393_v36  ;;  %1106 = vmatprep.subr.bf16.mxu0 %v384_v37  ;;  %v358_v56 = vld [vmem:[%s2172_s4 + $0x370] sm:$0xff]  ;;  %v439_v57 = vpack.c.bf16 %v375_v49, %v374_v47  ;;  %v359_v58 = vld [vmem:[%s2172_s4 + $0x378] sm:$0xff]  ;;  %v341_v21 = vld [vmem:[%s2172_s4 + $0x2e8] sm:$0xff]  ;;  %v132_v59 = vpack.c.bf16 %v124_v51, %v124_v51  ;;  %v134_v63 = vpack.c.bf16 %v126_v54, %v126_v54 }
  0x60   :  { %1128 = vmatprep.subr.bf16.mxu1 %v400_v40  ;;  %v129_v62 = vsel %vm123_vm0, %v69_v50, %v113_v13  ;;  %v415_v0 = vpack.c.bf16 %v327_v20, %v326_v10  ;;  %v131_v1 = vsel %vm123_vm0, %v70_v52, %v114_v53  ;;  %v431_v2 = vpack.c.bf16 %v359_v58, %v358_v56  ;;  %v324_v4 = vld [vmem:[%s2172_s4 + $0x260] sm:$0xff]  ;;  %v325_v5 = vld [vmem:[%s2172_s4 + $0x268] sm:$0xff]  ;;  %v338_v9 = vld [vmem:[%s2172_s4 + $0x2d0] sm:$0xff]  ;;  %p1200_p3 = por %p1199_p2, %p1198_p1 }
  0x61   :  { %v422_v3 = vpack.c.bf16 %v341_v21, %v340_v17  ;;  %v356_v6 = vld [vmem:[%s2172_s4 + $0x360] sm:$0xff]  ;;  %v438_v7 = vpack.c.bf16 %v373_v61, %v372_v60  ;;  %v357_v8 = vld [vmem:[%s2172_s4 + $0x368] sm:$0xff]  ;;  %v339_v11 = vld [vmem:[%s2172_s4 + $0x2d8] sm:$0xff]  ;;  %v137_v12 = vpack.c.bf16 %v129_v62, %v129_v62  ;;  %v139_v16 = vpack.c.bf16 %v131_v1, %v131_v1 }
  0x62   :  { %1107 = vmatpush3.bf16.msra.mxu0 %v376_v46  ;;  %v370_v14 = vld [vmem:[%s2172_s4 + $0x3d0] sm:$0xff]  ;;  %v371_v15 = vld [vmem:[%s2172_s4 + $0x3d8] sm:$0xff]  ;;  %v414_v18 = vpack.c.bf16 %v325_v5, %v324_v4  ;;  %v430_v19 = vpack.c.bf16 %v357_v8, %v356_v6  ;;  %v421_v22 = vpack.c.bf16 %v339_v11, %v338_v9  ;;  %v336_v28 = vld [vmem:[%s2172_s4 + $0x2c0] sm:$0xff]  ;;  %p1201_p4 = pnand %p1200_p3, %p1194_p0 }
  0x63   :  { %1129 = vmatpush3.bf16.msra.mxu1 %v392_v48  ;;  %1136 = vmatprep.subr.bf16.mxu0 %v423_v55  ;;  %v322_v23 = vld [vmem:[%s2172_s4 + $0x250] sm:$0xff]  ;;  %v323_v24 = vld [vmem:[%s2172_s4 + $0x258] sm:$0xff]  ;;  %v437_v26 = vpack.c.bf16 %v371_v15, %v370_v14  ;;  %v337_v29 = vld [vmem:[%s2172_s4 + $0x2c8] sm:$0xff] }
  0x64   :  { %1158 = vmatprep.subr.bf16.mxu1 %v439_v57  ;;  %v354_v25 = vld [vmem:[%s2172_s4 + $0x350] sm:$0xff]  ;;  %v355_v27 = vld [vmem:[%s2172_s4 + $0x358] sm:$0xff]  ;;  %v368_v30 = vld [vmem:[%s2172_s4 + $0x3c0] sm:$0xff]  ;;  %v413_v32 = vpack.c.bf16 %v323_v24, %v322_v23  ;;  %v420_v35 = vpack.c.bf16 %v337_v29, %v336_v28  ;;  %v128_v29 = vsel %vm123_vm0, %v1928_v33, %v1946_v44 }
  0x65   :  { %825 = vmatmul.mubr.bf16.vlgmr.msra.gmra.mxu0 %v132_v59  ;;  %v369_v31 = vld [vmem:[%s2172_s4 + $0x3c8] sm:$0xff]  ;;  %v429_v34 = vpack.c.bf16 %v355_v27, %v354_v25  ;;  %v320_v36 = vld [vmem:[%s2172_s4 + $0x240] sm:$0xff]  ;;  %v334_v42 = vld [vmem:[%s2172_s4 + $0x2b0] sm:$0xff] }
  0x66   :  { %865 = vmatmul.mubr.bf16.vlgmr.msra.gmra.mxu1 %v134_v63  ;;  %1137 = vmatpush3.bf16.msra.mxu0 %v415_v0  ;;  %v321_v37 = vld [vmem:[%s2172_s4 + $0x248] sm:$0xff]  ;;  %v352_v38 = vld [vmem:[%s2172_s4 + $0x340] sm:$0xff]  ;;  %v436_v40 = vpack.c.bf16 %v369_v31, %v368_v30  ;;  %v335_v43 = vld [vmem:[%s2172_s4 + $0x2b8] sm:$0xff]  ;;  %v130_v31 = vsel %vm123_vm0, %v1949_v45, %v1934_v39 }
  0x67   :  { %1159 = vmatpush3.bf16.msra.mxu1 %v431_v2  ;;  %1138 = vmatprep.subr.bf16.mxu0 %v422_v3  ;;  %v353_v41 = vld [vmem:[%s2172_s4 + $0x348] sm:$0xff]  ;;  %v366_v46 = vld [vmem:[%s2172_s4 + $0x3b0] sm:$0xff]  ;;  %v367_v47 = vld [vmem:[%s2172_s4 + $0x3b8] sm:$0xff]  ;;  %v412_v49 = vpack.c.bf16 %v321_v37, %v320_v36  ;;  %v419_v51 = vpack.c.bf16 %v335_v43, %v334_v42 }
  0x68   :  { %1160 = vmatprep.subr.bf16.mxu1 %v438_v7  ;;  %904 = vmatprep.mubr.bf16.mxu0 %v137_v12  ;;  %v428_v50 = vpack.c.bf16 %v353_v41, %v352_v38  ;;  %v318_v13 = vld [vmem:[%s2172_s4 + $0x230] sm:$0xff]  ;;  %v319_v52 = vld [vmem:[%s2172_s4 + $0x238] sm:$0xff]  ;;  %v435_v48 = vpack.c.bf16 %v367_v47, %v366_v46  ;;  %v332_v55 = vld [vmem:[%s2172_s4 + $0x2a0] sm:$0xff] }
  0x69   :  { %944 = vmatprep.mubr.bf16.mxu1 %v139_v16  ;;  %v350_v53 = vld [vmem:[%s2172_s4 + $0x330] sm:$0xff]  ;;  %v351_v54 = vld [vmem:[%s2172_s4 + $0x338] sm:$0xff]  ;;  %v333_v10 = vld [vmem:[%s2172_s4 + $0x2a8] sm:$0xff]  ;;  %v411_v57 = vpack.c.bf16 %v319_v52, %v318_v13 }
  0x6a   :  { %1139 = vmatpush3.bf16.msra.mxu0 %v414_v18  ;;  %v364_v20 = vld [vmem:[%s2172_s4 + $0x3a0] sm:$0xff]  ;;  %v365_v56 = vld [vmem:[%s2172_s4 + $0x3a8] sm:$0xff]  ;;  %v427_v58 = vpack.c.bf16 %v351_v54, %v350_v53  ;;  %v418_v17 = vpack.c.bf16 %v333_v10, %v332_v55  ;;  %v330_v63 = vld [vmem:[%s2172_s4 + $0x290] sm:$0xff] }
  0x6b   :  { %1161 = vmatpush3.bf16.msra.mxu1 %v430_v19  ;;  %1140 = vmatprep.subr.bf16.mxu0 %v421_v22  ;;  %v316_v21 = vld [vmem:[%s2172_s4 + $0x220] sm:$0xff]  ;;  %v317_v59 = vld [vmem:[%s2172_s4 + $0x228] sm:$0xff]  ;;  %v434_v61 = vpack.c.bf16 %v365_v56, %v364_v20  ;;  %v331_v0 = vld [vmem:[%s2172_s4 + $0x298] sm:$0xff] }
  0x6c   :  { %1162 = vmatprep.subr.bf16.mxu1 %v437_v26  ;;  %v348_v60 = vld [vmem:[%s2172_s4 + $0x320] sm:$0xff]  ;;  %v349_v62 = vld [vmem:[%s2172_s4 + $0x328] sm:$0xff]  ;;  %v362_v1 = vld [vmem:[%s2172_s4 + $0x390] sm:$0xff]  ;;  %v410_v3 = vpack.c.bf16 %v317_v59, %v316_v21  ;;  %v417_v5 = vpack.c.bf16 %v331_v0, %v330_v63 }
  0x6d   :  { %v363_v2 = vld [vmem:[%s2172_s4 + $0x398] sm:$0xff]  ;;  %v426_v4 = vpack.c.bf16 %v349_v62, %v348_v60  ;;  %v314_v6 = vld [vmem:[%s2172_s4 + $0x210] sm:$0xff]  ;;  %v328_v12 = vld [vmem:[%s2172_s4 + $0x280] sm:$0xff] }
  0x6e   :  { %1141 = vmatpush3.bf16.msra.mxu0 %v413_v32  ;;  %v315_v7 = vld [vmem:[%s2172_s4 + $0x218] sm:$0xff]  ;;  %v346_v8 = vld [vmem:[%s2172_s4 + $0x310] sm:$0xff]  ;;  %v433_v9 = vpack.c.bf16 %v363_v2, %v362_v1  ;;  %v329_v14 = vld [vmem:[%s2172_s4 + $0x288] sm:$0xff]  ;;  %v136_v32 = vpack.c.bf16 %v128_v29, %v128_v29 }
  0x6f   :  { %1163 = vmatpush3.bf16.msra.mxu1 %v429_v34  ;;  %1142 = vmatprep.subr.bf16.mxu0 %v420_v35  ;;  %v347_v11 = vld [vmem:[%s2172_s4 + $0x318] sm:$0xff]  ;;  %v360_v15 = vld [vmem:[%s2172_s4 + $0x380] sm:$0xff]  ;;  %v361_v16 = vld [vmem:[%s2172_s4 + $0x388] sm:$0xff]  ;;  %v409_v18 = vpack.c.bf16 %v315_v7, %v314_v6  ;;  %v416_v22 = vpack.c.bf16 %v329_v14, %v328_v12  ;;  %v138_v34 = vpack.c.bf16 %v130_v31, %v130_v31 }
  0x70   :  { %1164 = vmatprep.subr.bf16.mxu1 %v436_v40  ;;  %v425_v19 = vpack.c.bf16 %v347_v11, %v346_v8  ;;  %v312_v23 = vld [vmem:[%s2172_s4 + $0x200] sm:$0xff]  ;;  %v313_v24 = vld [vmem:[%s2172_s4 + $0x208] sm:$0xff]  ;;  %v432_v25 = vpack.c.bf16 %v361_v16, %v360_v15 }
  0x71   :  { %v344_v26 = vld [vmem:[%s2172_s4 + $0x300] sm:$0xff]  ;;  %v345_v27 = vld [vmem:[%s2172_s4 + $0x308] sm:$0xff]  ;;  %v408_v28 = vpack.c.bf16 %v313_v24, %v312_v23 }
  0x72   :  { %1143 = vmatpush3.bf16.msra.mxu0 %v412_v49  ;;  %v424_v30 = vpack.c.bf16 %v345_v27, %v344_v26  ;;  %v1003_v11 = vld [vmem:[%s2174_s6] ss:$0 sm:$0xff] }
  0x73   :  { %1165 = vmatpush3.bf16.msra.mxu1 %v428_v50  ;;  %1144 = vmatprep.subr.bf16.mxu0 %v419_v51 }
  0x74   :  { %1166 = vmatprep.subr.bf16.mxu1 %v435_v48 }
  0x76   :  { %1145 = vmatpush3.bf16.msra.mxu0 %v411_v57 }
  0x77   :  { %1167 = vmatpush3.bf16.msra.mxu1 %v427_v58  ;;  %1146 = vmatprep.subr.bf16.mxu0 %v418_v17 }
  0x78   :  { %1168 = vmatprep.subr.bf16.mxu1 %v434_v61 }
  0x7a   :  { %1147 = vmatpush3.bf16.msra.mxu0 %v410_v3 }
  0x7b   :  { %1169 = vmatpush3.bf16.msra.mxu1 %v426_v4  ;;  %1148 = vmatprep.subr.bf16.mxu0 %v417_v5 }
  0x7c   :  { %1170 = vmatprep.subr.bf16.mxu1 %v433_v9 }
  0x7e   :  { %1149 = vmatpush3.bf16.msra.mxu0 %v409_v18 }
  0x7f   :  { %1171 = vmatpush3.bf16.msra.mxu1 %v425_v19  ;;  %1150 = vmatprep.subr.bf16.mxu0 %v416_v22 }
  0x80   :  { %1172 = vmatprep.subr.bf16.mxu1 %v432_v25 }
  0x82   :  { %1151 = vmatpush3.bf16.msra.mxu0 %v408_v28 }
  0x83   :  { %1173 = vmatpush3.bf16.msra.mxu1 %v424_v30 }
  0x85   :  { %905 = vmatmul.mubr.bf16.vlgmr.msra.gmra.mxu0 %v136_v32 }
  0x86   :  { %945 = vmatmul.mubr.bf16.vlgmr.msra.gmra.mxu1 %v138_v34 }
  0xe5   :  { %v1020_v35 = vpop.f32.mrf.mxu0 }
  0xe6   :  { %v1042_v36 = vpop.f32.mrf.mxu1 }
  0xe7   :  { %v1021_v37 = vpop.f32.mrf.mxu0 }
  0xe8   :  { %v1022_v38 = vadd.f32 %v1021_v37, %v1020_v35  ;;  %v1043_v40 = vpop.f32.mrf.mxu1 }
  0xe9   :  { %v1044_v33 = vadd.f32 %v1043_v40, %v1042_v36  ;;  %v1023_v44 = vpop.f32.mrf.mxu0 }
  0xea   :  { %v1045_v41 = vpop.f32.mrf.mxu1 }
  0xeb   :  { %v707_v42 = vadd.f32 %v1044_v33, %v1022_v38  ;;  %v1024_v43 = vpop.f32.mrf.mxu0 }
  0xec   :  { %v1046_v46 = vpop.f32.mrf.mxu1 }
 0x105   :  { %v1064_v47 = vpop.f32.mrf.mxu0 }
 0x106   :  { %v1086_v39 = vpop.f32.mrf.mxu1 }
 0x107   :  { %v1065_v45 = vpop.f32.mrf.mxu0 }
 0x108   :  { %v1087_v49 = vpop.f32.mrf.mxu1  ;;  %v1066_v58 = vadd.f32 %v1065_v45, %v1064_v47 }
 0x109   :  { %v1067_v50 = vpop.f32.mrf.mxu0  ;;  %v1088_v21 = vadd.f32 %v1087_v49, %v1086_v39 }
 0x10a   :  { %v1089_v51 = vpop.f32.mrf.mxu1  ;;  %v747_v17 = vadd.f32 %v1066_v58, %v707_v42 }
 0x10b   :  { %v1068_v13 = vpop.f32.mrf.mxu0 }
 0x10c   :  { %v1090_v52 = vpop.f32.mrf.mxu1  ;;  %v787_v60 = vadd.f32 %v1088_v21, %v747_v17 }
 0x125   :  { %v1108_v53 = vpop.f32.mrf.mxu0 }
 0x126   :  { %v1130_v48 = vpop.f32.mrf.mxu1 }
 0x127   :  { %v1109_v54 = vpop.f32.mrf.mxu0 }
 0x128   :  { %v1131_v55 = vpop.f32.mrf.mxu1  ;;  %v1110_v59 = vadd.f32 %v1109_v54, %v1108_v53 }
 0x129   :  { %v1111_v10 = vpop.f32.mrf.mxu0  ;;  %v1132_v62 = vadd.f32 %v1131_v55, %v1130_v48 }
 0x12a   :  { %v1133_v20 = vpop.f32.mrf.mxu1  ;;  %v827_v61 = vadd.f32 %v1110_v59, %v787_v60 }
 0x12b   :  { %v1112_v56 = vpop.f32.mrf.mxu0 }
 0x12c   :  { %v1134_v57 = vpop.f32.mrf.mxu1  ;;  %v867_v2 = vadd.f32 %v1132_v62, %v827_v61 }
 0x145   :  { %v1152_v63 = vpop.f32.mrf.mxu0 }
 0x146   :  { %v1174_v0 = vpop.f32.mrf.mxu1 }
 0x147   :  { %v1153_v1 = vpop.f32.mrf.mxu0 }
 0x148   :  { %v1154_v3 = vadd.f32 %v1153_v1, %v1152_v63  ;;  %v1175_v4 = vpop.f32.mrf.mxu1 }
 0x149   :  { %v1155_v5 = vpop.f32.mrf.mxu0  ;;  %v1176_v7 = vadd.f32 %v1175_v4, %v1174_v0 }
 0x14a   :  { %v907_v6 = vadd.f32 %v1154_v3, %v867_v2  ;;  %v1177_v8 = vpop.f32.mrf.mxu1 }
 0x14b   :  { %v1156_v9 = vpop.f32.mrf.mxu0 }
 0x14c   :  { %v947_v12 = vadd.f32 %v1176_v7, %v907_v6  ;;  %v1178_v14 = vpop.f32.mrf.mxu1 }
 0x14e   :  { %v959_v15 = vadd.f32 %v1003_v11, %v947_v12 }
 0x150   :  { %v961_v16 = vmul.f32 %v959_v15, %v959_v15  ;;  %960 = vst [vmem:[#allocation2] sm:$0xf] %v959_v15 }
 0x152   :  { %v963_v18 = vsel %vm962_vm1, %v961_v16, 0.0 }
 0x153   :  { %964 = vadd.xlane.f32.xlu0 %v963_v18 }
 0x154   :  { %1204 = shalt.err (!%p1201_p4)
}
 0x155   :  { %985 = dma.vmem_to_hbm [thread:$0]  %s983_s27, 64, %s2175_s7, [#allocation3]  }
 0x156   :  { %s1227_s29 = smov [#allocation5]  }
 0x1dc   :  { %v965_v19 = vpop.xlane.xlu0 %964 }
 0x1dd   :  { %v966_v22 = vrot.slane %v965_v19, 4 }
 0x1df   :  { %v967_v23 = vadd.f32 %v966_v22, %v965_v19 }
 0x1e1   :  { %v968_v24 = vrot.slane %v967_v23, 2 }
 0x1e3   :  { %v969_v25 = vadd.f32 %v968_v24, %v967_v23 }
 0x1e5   :  { %v970_v26 = vrot.slane %v969_v25, 1 }
 0x1e7   :  { %v971_v27 = vadd.f32 %v970_v26, %v969_v25 }
 0x1e9   :  { %1180 = vpush %v971_v27 }
 0x21a   :  { %s1181_s28 = spop %1180 }
 0x21b   :  { %s973_s5 = smul.f32 0.5, %s1181_s28 }
 0x21d   :  { %975 = sst [smem:[#allocation5]] %s973_s5 }
 0x21e   :  { %993 = dma.smem_to_hbm %s1227_s29, 16, %s2176_s8, [#allocation4]  }
 0x21f   :  { %1221 = dma.done.wait [#allocation3], 64  }
 0x220   :  { %1222 = vsyncadd [#allocation3], 4294967232 }
 0x221   :  { %1223 = dma.done.wait [#allocation4], 16  }
 0x222   :  { %1224 = vsyncadd [#allocation4], 4294967280 }
 0x223   :  { %1000 = sfence }
 0x224   :  { %1001 = vsyncpa [#allocation3], 1 }
 0x225   :  { %1002 = vsyncpa [#allocation4], 1 }

</bundles_post_ra>
